<compile_context>
chip_gen: v6e
topology: v6e:2x2x1
jax: 0.10.0
libtpu: 0.0.40
codegen_flags: <defaults>
</compile_context>

<pallas_src>
import functools

import jax
import jax.numpy as jnp
import numpy as np
from jax.experimental import pallas as pl
from jax.experimental.pallas import tpu as pltpu


def _interp_matrix(out_size: int, in_size: int) -> np.ndarray:
    """Dense (out_size, in_size) 1-D matrix of F.interpolate(bilinear, align_corners=False)."""
    scale = in_size / out_size
    src = (np.arange(out_size, dtype=np.float64) + 0.5) * scale - 0.5
    src = np.maximum(src, 0.0)
    lo = np.floor(src).astype(np.int64)
    lam = (src - lo).astype(np.float32)
    lo = np.minimum(lo, in_size - 1)
    hi = np.minimum(lo + 1, in_size - 1)
    m = np.zeros((out_size, in_size), np.float32)
    rows = np.arange(out_size)
    np.add.at(m, (rows, lo), 1.0 - lam)
    np.add.at(m, (rows, hi), lam)
    return m


def _injector_kernel(x_sub_ref, pe_sub_ref, x_res_ref,
                     wq_ref, bq_ref, wkv_ref, bkv_ref,
                     kron_ref, gamma_ref,
                     out_ref,
                     fp_ref,
                     *, inv_sqrt_d, rows_per_tile, hidden_dim):
    t = pl.program_id(1)

    # ---- phase 1: once per batch element (first spatial tile) --------------
    @pl.when(t == 0)
    def _():
        xs = x_sub_ref[0]                                   # (N, C)  f32
        xa = xs * pe_sub_ref[0]                             # Fi * Pe at strided locs
        xs_b = xs.astype(jnp.bfloat16)                      # single cast, reused
        xa_b = xa.astype(jnp.bfloat16)

        # 1x1 stride-s convs == channel matmuls on the subsampled grid.
        # K and V weights fused into one (C, 2*Cd) RHS to fill the MXU.
        q = jnp.dot(xs_b, wq_ref[...],
                    preferred_element_type=jnp.float32) + bq_ref[...]
        kv = jnp.dot(xa_b, wkv_ref[...],
                     preferred_element_type=jnp.float32) + bkv_ref[...]
        k = kv[:, :hidden_dim]
        v = kv[:, hidden_dim:]

        # attention = softmax(Q K^T / sqrt(hidden_dim))   -> (N, N)
        att = jax.lax.dot_general(
            q.astype(jnp.bfloat16), k.astype(jnp.bfloat16),
            (((1,), (1,)), ((), ())),
            preferred_element_type=jnp.float32) * inv_sqrt_d
        att = att - jnp.max(att, axis=-1, keepdims=True)
        p = jnp.exp(att)
        att = p / jnp.sum(p, axis=-1, keepdims=True)        # exact divide (small)

        # fp = att @ V, held as a value and stored once as bf16 scratch.
        fp_ref[...] = jnp.dot(att.astype(jnp.bfloat16), v.astype(jnp.bfloat16),
                              preferred_element_type=jnp.float32
                              ).astype(jnp.bfloat16)        # (N, Cd)

    # ---- phase 2: every tile: full bilinear upsample as one MXU matmul -----
    row0 = pl.multiple_of(t * rows_per_tile, rows_per_tile)
    kron_tile = kron_ref[pl.ds(row0, rows_per_tile), :]     # (tile_rows, N) bf16
    up = jnp.dot(kron_tile, fp_ref[...],
                 preferred_element_type=jnp.float32)        # (tile_rows, C) f32
    out_ref[0] = gamma_ref[0] * up + x_res_ref[0]


def prior_aligned_injector(Fi, Pe, params, *, stride=4, tile_h=None):
    """Fi: (B, H, W, C) f32, Pe: (B, 1, H, W) f32 -> (B, H, W, C) f32."""
    B, H, W, C = Fi.shape
    Cd = params["wq"].shape[1]
    assert Cd == C, "residual add requires hidden_dim == in_channels (as in Injector_SAM)"
    Hs, Ws = -(-H // stride), -(-W // stride)    # conv out size for kernel=1, stride
    N = Hs * Ws
    HW = H * W

    # -- tile selection: biggest H-tile whose f32 slab stays <= 4 MiB ---------
    if tile_h is None:
        max_tile_bytes = 4 << 20
        tile_h = 1
        for d in range(1, H + 1):
            if H % d:
                continue
            if ((d * W) % 8) and d != H:          # (8,128) constraint on the block
                continue
            if d * W * C * 4 <= max_tile_bytes:
                tile_h = d
    T = H // tile_h
    rows_per_tile = tile_h * W

    # glue: strided subsampling (the spatial part of the stride-s 1x1 convs)
    x_sub = Fi[:, ::stride, ::stride, :].reshape(B, N, C)
    pe_sub = jnp.transpose(Pe, (0, 2, 3, 1))[:, ::stride, ::stride, :].reshape(B, N, 1)
    x_flat = Fi.reshape(B, HW, C)                 # lane-dense residual stream

    # Dense bilinear-upsample operator: kron(rowm, colm) : (H*W, N), bf16.
    rowm = _interp_matrix(H, Hs)
    colm = _interp_matrix(W, Ws)
    kron = jnp.asarray(np.kron(rowm, colm), dtype=jnp.bfloat16)

    wq = params["wq"].astype(jnp.bfloat16)
    wkv = jnp.concatenate([params["wk"], params["wv"]], axis=1).astype(jnp.bfloat16)
    bq = params["bq"].reshape(1, Cd).astype(jnp.float32)
    bkv = jnp.concatenate([params["bk"], params["bv"]]).reshape(1, 2 * Cd).astype(jnp.float32)
    gamma = params["gamma"].reshape(1).astype(jnp.float32)

    kernel = functools.partial(
        _injector_kernel,
        inv_sqrt_d=1.0 / float(Cd) ** 0.5,
        rows_per_tile=rows_per_tile,
        hidden_dim=Cd)

    smem = pl.BlockSpec(memory_space=pltpu.MemorySpace.SMEM)

    # Right-sized VMEM budget (double-buffered tiles + resident kron + weights).
    tile_bytes = rows_per_tile * C * 4
    vmem_est = (4 * tile_bytes                       # Fi tile + out tile, 2 bufs each
                + 2 * HW * N * 2                     # kron (bf16, 2 bufs, fetched once)
                + 2 * (N * C * 4 + N * 4)            # x_sub + pe_sub
                + 2 * (C * Cd * 2 + C * 2 * Cd * 2 + 3 * Cd * 4)
                + N * Cd * 2)                        # fp scratch
    vmem_limit = min(max(int(vmem_est * 1.4) + (2 << 20), 16 << 20), 48 << 20)

    flops = int(2 * B * (3 * N * C * Cd + 2 * N * N * Cd + HW * N * Cd)
                + 3 * B * HW * C)
    bytes_accessed = int(4 * (2 * B * HW * C + B * N * C + B * N)
                         + 2 * (HW * N + 3 * C * Cd) + 4 * 3 * Cd + 4)
    cost = pl.CostEstimate(flops=flops, transcendentals=int(B * N * N),
                           bytes_accessed=bytes_accessed)

    out = pl.pallas_call(
        kernel,
        out_shape=jax.ShapeDtypeStruct((B, HW, C), jnp.float32),
        grid_spec=pltpu.PrefetchScalarGridSpec(
            num_scalar_prefetch=0,
            grid=(B, T),
            in_specs=[
                pl.BlockSpec((1, N, C), lambda b, t: (b, 0, 0)),             # x_sub
                pl.BlockSpec((1, N, 1), lambda b, t: (b, 0, 0)),             # pe_sub
                pl.BlockSpec((1, rows_per_tile, C), lambda b, t: (b, t, 0)),  # Fi tile
                pl.BlockSpec((C, Cd), lambda b, t: (0, 0)),                  # Wq (bf16)
                pl.BlockSpec((1, Cd), lambda b, t: (0, 0)),                  # bq
                pl.BlockSpec((C, 2 * Cd), lambda b, t: (0, 0)),              # [Wk|Wv]
                pl.BlockSpec((1, 2 * Cd), lambda b, t: (0, 0)),              # [bk|bv]
                pl.BlockSpec((HW, N), lambda b, t: (0, 0)),                  # kron (resident)
                smem,                                                         # gamma
            ],
            out_specs=pl.BlockSpec((1, rows_per_tile, C), lambda b, t: (b, t, 0)),
            scratch_shapes=[
                pltpu.VMEM((N, Cd), jnp.bfloat16),   # fp: attention output (per batch)
            ],
        ),
        compiler_params=pltpu.CompilerParams(
            # NOTE: the T axis must stay "arbitrary" (sequential) — phase 1 at
            # t==0 populates fp_ref for all later tiles of the same batch elem.
            dimension_semantics=("parallel", "arbitrary"),
            vmem_limit_bytes=vmem_limit,
        ),
        cost_estimate=cost,
    )(x_sub, pe_sub, x_flat,
      wq, bq, wkv, bkv,
      kron, gamma)

    return out.reshape(B, H, W, C)


def _reference(Fi, Pe, params, stride=4):
    """Pure-JAX (f32) mirror of PriorAlignedInjector.forward."""
    B, H, W, C = Fi.shape
    Cd = params["wq"].shape[1]
    Hs, Ws = -(-H // stride), -(-W // stride)
    N = Hs * Ws
    x_sub = Fi[:, ::stride, ::stride, :].reshape(B, N, C)
    pe_sub = jnp.transpose(Pe, (0, 2, 3, 1))[:, ::stride, ::stride, :].reshape(B, N, 1)
    xa = x_sub * pe_sub
    q = x_sub @ params["wq"] + params["bq"]
    k = xa @ params["wk"] + params["bk"]
    v = xa @ params["wv"] + params["bv"]
    att = jnp.einsum("bnc,bmc->bnm", q, k) / float(Cd) ** 0.5
    att = jax.nn.softmax(att, axis=-1)
    fp = jnp.einsum("bnm,bmc->bnc", att, v).reshape(B, Hs, Ws, Cd)
    rowm = jnp.asarray(_interp_matrix(H, Hs))
    colm = jnp.asarray(_interp_matrix(W, Ws))
    up = jnp.einsum("hi,wj,bijc->bhwc", rowm, colm, fp)
    return params["gamma"][0] * up + Fi


if __name__ == "__main__":
    # in_channels == hidden_dim (as in Injector_SAM); C kept lane-aligned (128).
    B, H, W, C = 2, 32, 32, 128
    stride = 4

    key = jax.random.PRNGKey(0)
    kfi, kpe, kwq, kwk, kwv, kbq, kbk, kbv = jax.random.split(key, 8)

    Fi = jax.random.normal(kfi, (B, H, W, C), dtype=jnp.float32)
    Pe = jax.nn.sigmoid(jax.random.normal(kpe, (B, 1, H, W), dtype=jnp.float32))

    # Conv2d(C, C, 1, stride=4) weights stored transposed as (C_in, C_out).
    # gamma is nn.Parameter(zeros(1)) in PyTorch — set to 0.5 here so the
    # attention path actually contributes to the tested output.
    params = dict(
        wq=0.05 * jax.random.normal(kwq, (C, C), dtype=jnp.float32),
        wk=0.05 * jax.random.normal(kwk, (C, C), dtype=jnp.float32),
        wv=0.05 * jax.random.normal(kwv, (C, C), dtype=jnp.float32),
        bq=0.01 * jax.random.normal(kbq, (C,), dtype=jnp.float32),
        bk=0.01 * jax.random.normal(kbk, (C,), dtype=jnp.float32),
        bv=0.01 * jax.random.normal(kbv, (C,), dtype=jnp.float32),
        gamma=jnp.array([0.5], dtype=jnp.float32),
    )

    fn = jax.jit(functools.partial(prior_aligned_injector, stride=stride))
    out = jax.block_until_ready(fn(Fi, Pe, params))

    ref = _reference(Fi, Pe, params, stride=stride)
    assert out.shape == (B, H, W, C)
    # bf16 MXU operands (QKV, attention, bilinear-upsample matmul) vs f32
    # reference => widened tolerances.
    np.testing.assert_allclose(np.asarray(out), np.asarray(ref),
                               atol=2e-2, rtol=2e-2)

    print("KERNEL_OK")
</pallas_src>

<mosaic_0001>
module attributes {stable_mosaic.version = 11 : i64} {
  func.func @_injector_kernel(%arg0: i32, %arg1: i32, %arg2: memref<1x64x128xf32, #tpu.memory_space<vmem>>, %arg3: memref<1x64x1xf32, #tpu.memory_space<vmem>>, %arg4: memref<1x1024x128xf32, #tpu.memory_space<vmem>>, %arg5: memref<128x128xbf16, #tpu.memory_space<vmem>>, %arg6: memref<1x128xf32, #tpu.memory_space<vmem>>, %arg7: memref<128x256xbf16, #tpu.memory_space<vmem>>, %arg8: memref<1x256xf32, #tpu.memory_space<vmem>>, %arg9: memref<1024x64xbf16, #tpu.memory_space<vmem>>, %arg10: memref<1xf32, #tpu.memory_space<smem>>, %arg11: memref<1x1024x128xf32, #tpu.memory_space<vmem>>, %arg12: memref<64x128xbf16, #tpu.memory_space<vmem>>) attributes {dimension_semantics = [#tpu.dimension_semantics<parallel>, #tpu.dimension_semantics<arbitrary>], iteration_bounds = array<i64: 2, 1>, scalar_prefetch = 0 : i64, scratch_operands = 1 : i64, tpu.core_type = #tpu.core_type<tc>, window_params = [{transform_indices = @transform_0, window_bounds = array<i64: 1, 64, 128>}, {transform_indices = @transform_1, window_bounds = array<i64: 1, 64, 1>}, {transform_indices = @transform_2, window_bounds = array<i64: 1, 1024, 128>}, {pipeline_mode = #tpu.pipeline_mode<synchronous>, transform_indices = @transform_3, window_bounds = array<i64: 128, 128>}, {pipeline_mode = #tpu.pipeline_mode<synchronous>, transform_indices = @transform_4, window_bounds = array<i64: 1, 128>}, {pipeline_mode = #tpu.pipeline_mode<synchronous>, transform_indices = @transform_5, window_bounds = array<i64: 128, 256>}, {pipeline_mode = #tpu.pipeline_mode<synchronous>, transform_indices = @transform_6, window_bounds = array<i64: 1, 256>}, {pipeline_mode = #tpu.pipeline_mode<synchronous>, transform_indices = @transform_7, window_bounds = array<i64: 1024, 64>}, {transform_indices = @transform_8, window_bounds = array<i64: 1>}, {transform_indices = @transform_9, window_bounds = array<i64: 1, 1024, 128>}]} {
    %c0_i32 = arith.constant 0 : i32
    %0 = arith.cmpi eq, %arg1, %c0_i32 : i32
    %1 = arith.extui %0 : i1 to i32
    %c0_i32_0 = arith.constant 0 : i32
    %2 = arith.cmpi ne, %1, %c0_i32_0 : i32
    scf.if %2 {
      %c0_10 = arith.constant 0 : index
      %c0_11 = arith.constant 0 : index
      %c0_12 = arith.constant 0 : index
      %18 = vector.load %arg2[%c0_10, %c0_11, %c0_12] : memref<1x64x128xf32, #tpu.memory_space<vmem>>, vector<1x64x128xf32>
      %19 = vector.shape_cast %18 : vector<1x64x128xf32> to vector<64x128xf32>
      %c0_13 = arith.constant 0 : index
      %c0_14 = arith.constant 0 : index
      %c0_15 = arith.constant 0 : index
      %20 = vector.load %arg3[%c0_13, %c0_14, %c0_15] : memref<1x64x1xf32, #tpu.memory_space<vmem>>, vector<1x64x1xf32>
      %21 = vector.shape_cast %20 : vector<1x64x1xf32> to vector<64x1xf32>
      %22 = vector.broadcast %21 : vector<64x1xf32> to vector<64x128xf32>
      %23 = arith.mulf %19, %22 : vector<64x128xf32>
      %24 = arith.truncf %19 : vector<64x128xf32> to vector<64x128xbf16>
      %25 = arith.truncf %23 : vector<64x128xf32> to vector<64x128xbf16>
      %c0_16 = arith.constant 0 : index
      %c0_17 = arith.constant 0 : index
      %26 = vector.load %arg5[%c0_16, %c0_17] : memref<128x128xbf16, #tpu.memory_space<vmem>>, vector<128x128xbf16>
      %cst_18 = arith.constant dense<0.000000e+00> : vector<64x128xf32>
      %27 = tpu.matmul %24, %26, %cst_18 {dimension_numbers = #tpu.dot_dimension_numbers<[1], [0], [0], [1], [0, 0, 1, 1], [], []>} : vector<64x128xbf16>, vector<128x128xbf16>, vector<64x128xf32> -> vector<64x128xf32>
      %c0_19 = arith.constant 0 : index
      %c0_20 = arith.constant 0 : index
      %28 = vector.load %arg6[%c0_19, %c0_20] : memref<1x128xf32, #tpu.memory_space<vmem>>, vector<1x128xf32>
      %29 = vector.broadcast %28 : vector<1x128xf32> to vector<64x128xf32>
      %30 = arith.addf %27, %29 : vector<64x128xf32>
      %c0_21 = arith.constant 0 : index
      %c0_22 = arith.constant 0 : index
      %31 = vector.load %arg7[%c0_21, %c0_22] : memref<128x256xbf16, #tpu.memory_space<vmem>>, vector<128x256xbf16>
      %cst_23 = arith.constant dense<0.000000e+00> : vector<64x256xf32>
      %32 = tpu.matmul %25, %31, %cst_23 {dimension_numbers = #tpu.dot_dimension_numbers<[1], [0], [0], [1], [0, 0, 1, 1], [], []>} : vector<64x128xbf16>, vector<128x256xbf16>, vector<64x256xf32> -> vector<64x256xf32>
      %c0_24 = arith.constant 0 : index
      %c0_25 = arith.constant 0 : index
      %33 = vector.load %arg8[%c0_24, %c0_25] : memref<1x256xf32, #tpu.memory_space<vmem>>, vector<1x256xf32>
      %34 = vector.broadcast %33 : vector<1x256xf32> to vector<64x256xf32>
      %35 = arith.addf %32, %34 : vector<64x256xf32>
      %36 = vector.extract_strided_slice %35 {offsets = [0, 0], sizes = [64, 128], strides = [1, 1]} : vector<64x256xf32> to vector<64x128xf32>
      %37 = vector.extract_strided_slice %35 {offsets = [0, 128], sizes = [64, 128], strides = [1, 1]} : vector<64x256xf32> to vector<64x128xf32>
      %38 = arith.truncf %30 : vector<64x128xf32> to vector<64x128xbf16>
      %39 = arith.truncf %36 : vector<64x128xf32> to vector<64x128xbf16>
      %cst_26 = arith.constant dense<0.000000e+00> : vector<64x64xf32>
      %40 = tpu.matmul %38, %39, %cst_26 {dimension_numbers = #tpu.dot_dimension_numbers<[1], [1], [0], [0], [0, 0, 1, 0], [], []>} : vector<64x128xbf16>, vector<64x128xbf16>, vector<64x64xf32> -> vector<64x64xf32>
      %cst_27 = arith.constant 0.0883883461 : f32
      %41 = vector.broadcast %cst_27 : f32 to vector<64x64xf32>
      %42 = arith.mulf %40, %41 : vector<64x64xf32>
      %cst_28 = arith.constant dense<0xFF800000> : vector<64xf32>
      %43 = vector.multi_reduction <maximumf>, %42, %cst_28 [1] : vector<64x64xf32> to vector<64xf32>
      %44 = vector.shape_cast %43 : vector<64xf32> to vector<64x1xf32>
      %45 = vector.broadcast %44 : vector<64x1xf32> to vector<64x64xf32>
      %46 = arith.subf %42, %45 : vector<64x64xf32>
      %47 = math.exp %46 : vector<64x64xf32>
      %cst_29 = arith.constant dense<0.000000e+00> : vector<64xf32>
      %48 = vector.multi_reduction <add>, %47, %cst_29 [1] : vector<64x64xf32> to vector<64xf32>
      %49 = vector.shape_cast %48 : vector<64xf32> to vector<64x1xf32>
      %50 = vector.broadcast %49 : vector<64x1xf32> to vector<64x64xf32>
      %51 = arith.divf %47, %50 : vector<64x64xf32>
      %52 = arith.truncf %51 : vector<64x64xf32> to vector<64x64xbf16>
      %53 = arith.truncf %37 : vector<64x128xf32> to vector<64x128xbf16>
      %cst_30 = arith.constant dense<0.000000e+00> : vector<64x128xf32>
      %54 = tpu.matmul %52, %53, %cst_30 {dimension_numbers = #tpu.dot_dimension_numbers<[1], [0], [0], [1], [0, 0, 1, 1], [], []>} : vector<64x64xbf16>, vector<64x128xbf16>, vector<64x128xf32> -> vector<64x128xf32>
      %55 = arith.truncf %54 : vector<64x128xf32> to vector<64x128xbf16>
      %c0_31 = arith.constant 0 : index
      %c0_32 = arith.constant 0 : index
      %56 = vector.load %arg12[%c0_31, %c0_32] : memref<64x128xbf16, #tpu.memory_space<vmem>>, vector<64x128xbf16>
      tpu.vector_store %arg12[%c0_31, %c0_32], %55 {strides = array<i32>} : memref<64x128xbf16, #tpu.memory_space<vmem>>, vector<64x128xbf16>,
    } else {
    }
    %c1024_i32 = arith.constant 1024 : i32
    %3 = arith.muli %arg1, %c1024_i32 : i32
    %4 = tpu.assume_multiple %3, 1024 : i32
    %5 = arith.index_cast %4 : i32 to index
    %c0 = arith.constant 0 : index
    %6 = vector.load %arg9[%5, %c0] : memref<1024x64xbf16, #tpu.memory_space<vmem>>, vector<1024x64xbf16>
    %c0_1 = arith.constant 0 : index
    %c0_2 = arith.constant 0 : index
    %7 = vector.load %arg12[%c0_1, %c0_2] : memref<64x128xbf16, #tpu.memory_space<vmem>>, vector<64x128xbf16>
    %cst = arith.constant dense<0.000000e+00> : vector<1024x128xf32>
    %8 = tpu.matmul %6, %7, %cst {dimension_numbers = #tpu.dot_dimension_numbers<[1], [0], [0], [1], [0, 0, 1, 1], [], []>} : vector<1024x64xbf16>, vector<64x128xbf16>, vector<1024x128xf32> -> vector<1024x128xf32>
    %c0_3 = arith.constant 0 : index
    %9 = memref.load %arg10[%c0_3] : memref<1xf32, #tpu.memory_space<smem>>
    %10 = vector.broadcast %9 : f32 to vector<1024x128xf32>
    %11 = arith.mulf %10, %8 : vector<1024x128xf32>
    %c0_4 = arith.constant 0 : index
    %c0_5 = arith.constant 0 : index
    %c0_6 = arith.constant 0 : index
    %12 = vector.load %arg4[%c0_4, %c0_5, %c0_6] : memref<1x1024x128xf32, #tpu.memory_space<vmem>>, vector<1x1024x128xf32>
    %13 = vector.shape_cast %12 : vector<1x1024x128xf32> to vector<1024x128xf32>
    %14 = arith.addf %11, %13 : vector<1024x128xf32>
    %c0_7 = arith.constant 0 : index
    %c0_8 = arith.constant 0 : index
    %c0_9 = arith.constant 0 : index
    %15 = vector.load %arg11[%c0_7, %c0_8, %c0_9] : memref<1x1024x128xf32, #tpu.memory_space<vmem>>, vector<1x1024x128xf32>
    %16 = vector.shape_cast %15 : vector<1x1024x128xf32> to vector<1024x128xf32>
    %17 = vector.shape_cast %14 : vector<1024x128xf32> to vector<1x1024x128xf32>
    tpu.vector_store %arg11[%c0_7, %c0_8, %c0_9], %17 {strides = array<i32>} : memref<1x1024x128xf32, #tpu.memory_space<vmem>>, vector<1x1024x128xf32>,
    return
  }
  func.func @transform_0(%arg0: i32, %arg1: i32) -> (i32, i32, i32) {
    %c0_i32 = arith.constant 0 : i32
    %c0_i32_0 = arith.constant 0 : i32
    %c0_i32_1 = arith.constant 0 : i32
    return %arg0, %c0_i32, %c0_i32_0 : i32, i32, i32
  }
  func.func @transform_1(%arg0: i32, %arg1: i32) -> (i32, i32, i32) {
    %c0_i32 = arith.constant 0 : i32
    %c0_i32_0 = arith.constant 0 : i32
    %c0_i32_1 = arith.constant 0 : i32
    return %arg0, %c0_i32, %c0_i32_0 : i32, i32, i32
  }
  func.func @transform_2(%arg0: i32, %arg1: i32) -> (i32, i32, i32) {
    %c0_i32 = arith.constant 0 : i32
    %c0_i32_0 = arith.constant 0 : i32
    return %arg0, %arg1, %c0_i32 : i32, i32, i32
  }
  func.func @transform_3(%arg0: i32, %arg1: i32) -> (i32, i32) {
    %c0_i32 = arith.constant 0 : i32
    %c0_i32_0 = arith.constant 0 : i32
    %c0_i32_1 = arith.constant 0 : i32
    return %c0_i32, %c0_i32_0 : i32, i32
  }
  func.func @transform_4(%arg0: i32, %arg1: i32) -> (i32, i32) {
    %c0_i32 = arith.constant 0 : i32
    %c0_i32_0 = arith.constant 0 : i32
    %c0_i32_1 = arith.constant 0 : i32
    return %c0_i32, %c0_i32_0 : i32, i32
  }
  func.func @transform_5(%arg0: i32, %arg1: i32) -> (i32, i32) {
    %c0_i32 = arith.constant 0 : i32
    %c0_i32_0 = arith.constant 0 : i32
    %c0_i32_1 = arith.constant 0 : i32
    return %c0_i32, %c0_i32_0 : i32, i32
  }
  func.func @transform_6(%arg0: i32, %arg1: i32) -> (i32, i32) {
    %c0_i32 = arith.constant 0 : i32
    %c0_i32_0 = arith.constant 0 : i32
    %c0_i32_1 = arith.constant 0 : i32
    return %c0_i32, %c0_i32_0 : i32, i32
  }
  func.func @transform_7(%arg0: i32, %arg1: i32) -> (i32, i32) {
    %c0_i32 = arith.constant 0 : i32
    %c0_i32_0 = arith.constant 0 : i32
    %c0_i32_1 = arith.constant 0 : i32
    return %c0_i32, %c0_i32_0 : i32, i32
  }
  func.func @transform_8(%arg0: i32, %arg1: i32) -> i32 {
    %c0_i32 = arith.constant 0 : i32
    %c0_i32_0 = arith.constant 0 : i32
    return %c0_i32 : i32
  }
  func.func @transform_9(%arg0: i32, %arg1: i32) -> (i32, i32, i32) {
    %c0_i32 = arith.constant 0 : i32
    %c0_i32_0 = arith.constant 0 : i32
    return %arg0, %arg1, %c0_i32 : i32, i32, i32
  }
}

</mosaic_0001>

<bundles_post_ra>
// kernel: prior_aligned_injector.1
= control target key start
LH: loop header
LB: loop body
LE: loop exit
PB: predicated region body
PF: predicated region fallthrough
CT: control target
= control target key end

     0   :  { %s4802_s0 = inlined_call_operand.vmem [shape: f32[2,64,128], index: 0, kind: input, shape index: {}]   ;;  %s4803_s1 = inlined_call_operand.vmem [shape: f32[2,64,1], index: 1, kind: input, shape index: {}]   ;;  %s4804_s2 = inlined_call_operand.hbm [shape: f32[2,1024,128], index: 2, kind: input, shape index: {}]   ;;  %s4805_s3 = inlined_call_operand.vmem [shape: bf16[128,128], index: 3, kind: input, shape index: {}]   ;;  %s4806_s4 = inlined_call_operand.vmem [shape: f32[1,128], index: 4, kind: input, shape index: {}]   ;;  %s4807_s5 = inlined_call_operand.vmem [shape: bf16[128,256], index: 5, kind: input, shape index: {}]   ;;  %s4808_s6 = inlined_call_operand.vmem [shape: f32[1,256], index: 6, kind: input, shape index: {}]   ;;  %s4809_s7 = inlined_call_operand.vmem [shape: bf16[1024,64], index: 7, kind: input, shape index: {}]   ;;  %s4810_s8 = inlined_call_operand.<no memory space> [shape: f32[1], index: 8, kind: input, shape index: {}]   ;;  %s4811_s9 = inlined_call_operand.hbm [shape: f32[2,1024,128], index: 9, kind: output, shape index: {}]  }
   0x1   :  { %4815 = sst [smem:[#allocation12_spill]] %s4803_s1 }
   0x2   :  { %14 = sst [smem:[#allocation3]] %s4810_s8 }
   0x3   :  { %15 = vsyncpa [#allocation5], 0 }
   0x4   :  { %17 = vsyncpa [#allocation5 + $0x1], 0 }
   0x5   :  { %18 = vsyncpa [#allocation6], 0 }
   0x6   :  { %20 = vsyncpa [#allocation6 + $0x1], 0  ;;  %s3857_s11 = smov 0   ;;  %s3859_s12 = smov 0  }
   0x7   :  { %s3861_s13 = smov 0   ;;  %s3863_s14 = smov 0  }
   0x8   :  { %s3865_s15 = smov 0   ;;  %s3867_s16 = smov 0  }
   0x9 LB: > { %4816 = sst [smem:[#allocation10_spill]] %s3791_s15  ;;  %s2967_s8 = sadd.s32 4294967295, %s3795_s16   ;;  %s3795_s16 = sphi %s3867_s16, %s26_s16   ;;  %s3791_s15 = sphi %s3865_s15, %s4827_s15   ;;  %s3787_s14 = sphi %s3863_s14, %s4826_s14   ;;  %s3783_s13 = sphi %s3861_s13, %s4830_s13   ;;  %s3779_s12 = sphi %s3859_s12, %s4829_s12   ;;  %s3775_s11 = sphi %s3857_s11, %s4828_s11  }
   0xa   : > { %s2968_s17 = sadd.s32 4294967294, %s3795_s16   ;;  %s38_s18 = sadd.s32 1, %s3791_s15 }
   0xb   : > { %s99_s19 = sadd.s32 1, %s3783_s13  ;;  %p40_p0 = scmp.ge.s32.totalorder %s38_s18, 2 }
   0xc   : > { %p106_p1 = scmp.ne.s32.totalorder %s3783_s13, %s3779_s12  ;;  %p107_p2 = scmp.eq.s32.totalorder %s3795_s16, 0 }
   0xd   : > { %p112_p3 = scmp.ne.s32.totalorder %s3779_s12, %s3775_s11  ;;  %s4832_s18 = smov (%p40_p0, %s38_s18), 0 }
   0xe   : > { %4817 = sst [smem:[#allocation11_spill]] %s4832_s18  ;;  %p3898_p4 = por %p107_p2, %p106_p1 }
   0xf   : > { %p113_p5 = scmp.eq.s32.totalorder %s2967_s8, 0  ;;  %s94_s21 = ssub.s32 %s3791_s15, %s4832_s18 }
  0x10   : > { %p264_p6 = scmp.eq.s32.totalorder %s2967_s8, 1  ;;  %p97_p7 = scmp.eq.s32.totalorder %s94_s21, 0 }
  0x11   : > { %p3904_p8 = por %p113_p5, %p112_p3  ;;  %p270_p10 = scmp.eq.s32.totalorder %s2968_s17, 1 }
  0x12   : > { %p3908_p9 = por %p264_p6, %p106_p1  ;;  %p3498_p13 = scmp.lt.s32.totalorder %s3795_s16, 2 }
  0x13   : > { %s3913_s24 = scalar_select %p97_p7, %s3783_s13, %s99_s19  }
  0x14   : > { %p3915_p11 = por %p270_p10, %p112_p3  ;;  %s324_s26 = sand.u32 1, %s3783_s13  }
  0x15   : > { %s2971_s27 = sshll.u32 %s324_s26, 10  ;;  %s3155_s28 = sshll.u32 %s3791_s15, 14 }
  0x16   : > { %s336_s10 = scalar_lea.hbm %s4804_s2, %s3155_s28  ;;  %s328_s8 = scalar_lea.vmem [#allocation4], %s2971_s27 }
  0x17   : > { %s337_s21 = sshll.u32 %s328_s8, 4  ;;  %p3928_p0 = pnand %p3498_p13, %p3898_p4  ;;  %s338_s21 = int_to_ptr.vmem [resolvable:$true] %s337_s21 }
  0x18   : > { %p2974_p1 = scmp.ge.s32.totalorder %s3795_s16, 1  ;;  %s325_s19 = scalar_lea.sflag [#allocation5], %s324_s26 }
  0x19   : > { %p3689_p2 = pneg %p3928_p0  ;;  %s3700_s18 = scalar_lea.vmem %s338_s21, 16384 }
  0x1a   : > { %p3701_p3 = scmp.ne.s32.totalorder %s338_s21, %s3700_s18  ;;  %s3797_s15 = smov [#allocation4]  }
  0x1b   : > { %s3705_s29 = sshll.u32 %s3797_s15, 4  ;;  %s3706_s29 = int_to_ptr.vmem [resolvable:$false] %s3705_s29 }
  0x1c   : > { %p3703_p5 = pnand %p3701_p3, %p3689_p2  ;;  %s3707_s27 = scalar_lea.vmem %s3706_s29, 32768 }
  0x1d   : > { %p3708_p7 = scmp.lt.s32.totalorder %s338_s21, %s3706_s29  ;;  %p3709_p10 = scmp.lt.s32.totalorder %s3707_s27, %s3700_s18 }
  0x1e   : > { %p3704_p6 = pneg %p3703_p5 }
  0x1f   : > { %p3710_p12 = por %p3709_p10, %p3708_p7 }
  0x21   : > { %p3711_p4 = pnand %p3710_p12, %p3704_p6 }
  0x23   : > { %3714 = shalt.err (!%p3711_p4)
}
  0x24   : > { %s3798_s20 = smov 128   ;;  %s3799_s26 = smov 8  }
  0x25   : > { %3493 = dma.hbm_to_vmem [thread:$0]  (!%p3928_p0), %s336_s10, 16384, %s338_s21, %s325_s19, %s3798_s20, %s3798_s20, %s3799_s26  }
  0x26   : > { %p345_p13 = scmp.lt.s32.totalorder %s3795_s16, 3 }
  0x28   : > { %p346_p2 = pnand %p2974_p1, %p345_p13 }
  0x29   : > { %s3941_s15 = sand.u32 (!%p346_p2), 1, %s3779_s12  }
  0x2a   : > { %349 = sbr.rel (%p346_p2) target bundleno = 1533 (0x5fd), region = 56  ;;  %s4814_s18 = sshll.u32 (!%p346_p2), %s3941_s15, 10 }
  0x2b   : > { %s352_s28 = scalar_lea.sflag (!%p346_p2), [#allocation5], %s3941_s15  ;;  %s3947_s30 = scalar_lea.vmem (!%p346_p2), [#allocation4], %s4814_s18 }
  0x2f   : > { %3766 = dma.done.wait (%p3904_p8), %s352_s28, 16384  }
  0x30   : > { %3768 = vsyncadd (%p3904_p8), %s352_s28, 4294950912  ;;  %p400_p12 = scmp.lt.s32.totalorder %s3787_s14, 1  ;;  %v3800_v0 = vmov 0   ;;  %s4823_s1 = sld [smem:[#allocation12_spill]]  ;;  %v3555_v5 = vld [vmem:[%s4807_s5 + $0x74] ss:$8 sps:$4 sm:$0xff]  }
  0x31   : > { %3554 = vset.pattern.permute.xlu1 %v3800_v0  ;;  %3553 = vset.pattern.permute.xlu0 %v3800_v0  ;;  %v3557_v6 = vld [vmem:[%s4807_s5 + $0x70] ss:$8 sps:$4 sm:$0xff]   ;;  %v3558_v7 = vld [vmem:[%s4807_s5 + $0x64] ss:$8 sps:$4 sm:$0xff]   ;;  %v3560_v10 = vld [vmem:[%s4807_s5 + $0x60] ss:$8 sps:$4 sm:$0xff]  }
  0x32   : > { %s3957_s10 = scalar_select %p400_p12, %s3787_s14, 1  ;;  %765 = vmatprep.mubr.bf16.mxu1 %v3800_v0  ;;  %733 = vmatprep.subr.bf16.mxu1 %v3555_v5  ;;  %v3561_v11 = vld [vmem:[%s4807_s5 + $0x54] ss:$8 sps:$4 sm:$0xff]   ;;  %v3563_v14 = vld [vmem:[%s4807_s5 + $0x50] ss:$8 sps:$4 sm:$0xff]   ;;  %v3581_v23 = vld [vmem:[%s4805_s3 + $0x28] sm:$0xff]  }
  0x33   : > { %734 = vmatpush1.bf16.msra.mxu1 %v3557_v6  ;;  %v3564_v15 = vld [vmem:[%s4807_s5 + $0x44] ss:$8 sps:$4 sm:$0xff]   ;;  %v3566_v16 = vld [vmem:[%s4807_s5 + $0x40] ss:$8 sps:$4 sm:$0xff]   ;;  %v3567_v17 = vld [vmem:[%s4807_s5 + $0x34] ss:$8 sps:$4 sm:$0xff]  }
  0x34   : > { %s3156_s8 = sshll.u32 %s3957_s10, 6  ;;  %735 = vmatprep.subr.bf16.mxu1 %v3558_v7  ;;  %v3579_v18 = vld [vmem:[%s4805_s3 + $0x38] sm:$0xff]   ;;  %v3570_v20 = vld [vmem:[%s4807_s5 + $0x24] ss:$8 sps:$4 sm:$0xff]   ;;  %v3572_v21 = vld [vmem:[%s4807_s5 + $0x20] ss:$8 sps:$4 sm:$0xff]  }
  0x35   : > { %v3569_v19 = vld [vmem:[%s4807_s5 + $0x30] ss:$8 sps:$4 sm:$0xff]   ;;  %3286 = vmatprep.subr.bf16.mxu0 %v3579_v18  ;;  %v3573_v24 = vld [vmem:[%s4807_s5 + $0x14] ss:$8 sps:$4 sm:$0xff]   ;;  %v3576_v28 = vld [vmem:[%s4807_s5 + $0x4] ss:$8 sps:$4 sm:$0xff]  }
  0x36   : > { %s409_s22 = scalar_lea.vmem %s4823_s1, %s3156_s8  ;;  %3287 = vmatpush3.bf16.msra.mxu0 %v3579_v18  ;;  %v3580_v22 = vld [vmem:[%s4805_s3 + $0x30] sm:$0xff]   ;;  %s4019_s1 = scalar_lea.vmem %s4802_s0, %s3156_s8  ;;  %v3582_v29 = vld [vmem:[%s4805_s3 + $0x20] sm:$0xff]   ;;  %v3583_v30 = vld [vmem:[%s4805_s3 + $0x18] sm:$0xff]   ;;  %vm887_vm0 = vcmask 523264  }
  0x37   : > { %v427_v1 = vld [vmem:[%s409_s22 + $0x10] sm:$0xff]  ;;  %v425_v2 = vld [vmem:[%s409_s22] sm:$0xff]  ;;  %v428_v3 = vld [vmem:[%s409_s22 + $0x18] sm:$0xff]  ;;  %736 = vmatpush1.bf16.msra.mxu1 %v3560_v10  ;;  %3288 = vmatprep.subr.bf16.mxu0 %v3580_v22  ;;  %s2324_s8 = sld [smem:[#allocation3]]  ;;  %s4824_s29 = sshll.u32 %s3941_s15, 10 }
  0x38   : > { %445 = vperm.xlu1 %3554, %v427_v1   ;;  %435 = vperm.xlu0 %3553, %v425_v2   ;;  %v426_v4 = vld [vmem:[%s409_s22 + $0x8] sm:$0xff]  ;;  %v429_v9 = vld [vmem:[%s409_s22 + $0x20] sm:$0xff]  ;;  %v432_v12 = vld [vmem:[%s409_s22 + $0x38] sm:$0xff]  ;;  %s4371_s27 = scalar_lea.vmem [#allocation7], %s4824_s29  ;;  %s3166_s20 = sshll.u32 %s3787_s14, 14 }
  0x39   : > { %v430_v8 = vld [vmem:[%s409_s22 + $0x28] sm:$0xff]  ;;  %v431_v13 = vld [vmem:[%s409_s22 + $0x30] sm:$0xff]  ;;  %737 = vmatprep.subr.bf16.mxu1 %v3561_v11  ;;  %v417_v26 = vld [vmem:[%s4019_s1] sm:$0xff]  ;;  %s2854_s26 = sshll.u32 %s4371_s27, 4  ;;  %s4748_s14 = scalar_lea.hbm %s4811_s9, %s3166_s20  ;;  %s4750_s26 = int_to_ptr.vmem [resolvable:$true] %s2854_s26 }
  0x3a   : > { %3289 = vmatpush3.bf16.msra.mxu0 %v3580_v22  ;;  %v3575_v25 = vld [vmem:[%s4807_s5 + $0x10] ss:$8 sps:$4 sm:$0xff]   ;;  %v418_v27 = vld [vmem:[%s4019_s1 + $0x8] sm:$0xff]  ;;  %v3586_v35 = vld [vmem:[%s4805_s3] sm:$0xff]   ;;  %s3715_s21 = scalar_lea.vmem %s4750_s26, 16384  ;;  %s3801_s17 = smov [#allocation7]  }
  0x3b   : > { %738 = vmatpush1.bf16.msra.mxu1 %v3563_v14  ;;  %3290 = vmatprep.subr.bf16.mxu0 %v3581_v23  ;;  %v481_v31 = vpack.c.bf16 %v418_v27, %v417_v26  ;;  %v3578_v32 = vld [vmem:[%s4807_s5] ss:$8 sps:$4 sm:$0xff]   ;;  %v3584_v33 = vld [vmem:[%s4805_s3 + $0x10] sm:$0xff]   ;;  %v420_v37 = vld [vmem:[%s4019_s1 + $0x18] sm:$0xff]  ;;  %p3716_p8 = scmp.ne.s32.totalorder %s4750_s26, %s3715_s21  ;;  %s3719_s19 = sshll.u32 %s3801_s17, 4  ;;  %s3720_s19 = int_to_ptr.vmem [resolvable:$false] %s3719_s19 }
  0x3c   : > { %450 = vperm.xlu1 %3554, %v428_v3   ;;  %440 = vperm.xlu0 %3553, %v426_v4   ;;  %v3585_v34 = vld [vmem:[%s4805_s3 + $0x8] sm:$0xff]   ;;  %v419_v36 = vld [vmem:[%s4019_s1 + $0x10] sm:$0xff]  ;;  %v421_v39 = vld [vmem:[%s4019_s1 + $0x20] sm:$0xff]  ;;  %s3721_s22 = scalar_lea.vmem %s3720_s19, 32768  ;;  %p3722_p3 = scmp.lt.s32.totalorder %s4750_s26, %s3720_s19 }
  0x3d   : > { %739 = vmatprep.subr.bf16.mxu1 %v3564_v15  ;;  %3302 = vmatprep.mubr.bf16.mxu0 %v481_v31  ;;  %v422_v38 = vld [vmem:[%s4019_s1 + $0x28] sm:$0xff]  ;;  %v482_v40 = vpack.c.bf16 %v420_v37, %v419_v36  ;;  %v424_v42 = vld [vmem:[%s4019_s1 + $0x38] sm:$0xff]  ;;  %v423_v43 = vld [vmem:[%s4019_s1 + $0x30] sm:$0xff]  ;;  %p3717_p0 = pnand %p3716_p8, %p3908_p9  ;;  %p3723_p5 = scmp.lt.s32.totalorder %s3721_s22, %s3715_s21 }
  0x3e   : > { %3291 = vmatpush3.bf16.msra.mxu0 %v3581_v23  ;;  %v483_v41 = vpack.c.bf16 %v422_v38, %v421_v39  ;;  %v484_v44 = vpack.c.bf16 %v424_v42, %v423_v43  ;;  %v4059_v2 = vld [vmem:[%s4806_s4] ss:$0 sm:$0xff] }
  0x3f   : > { %740 = vmatpush1.bf16.msra.mxu1 %v3566_v16  ;;  %3292 = vmatprep.subr.bf16.mxu0 %v3582_v29  ;;  %p3718_p1 = pneg %p3717_p0  ;;  %p3724_p6 = por %p3723_p5, %p3722_p3 }
  0x40   : > { %460 = vperm.xlu1 %3554, %v430_v8   ;;  %455 = vperm.xlu0 %3553, %v429_v9  }
  0x41   : > { %741 = vmatprep.subr.bf16.mxu1 %v3567_v17  ;;  %p3725_p7 = pnand %p3724_p6, %p3718_p1 }
  0x42   : > { %3293 = vmatpush3.bf16.msra.mxu0 %v3582_v29 }
  0x43   : > { %742 = vmatpush1.bf16.msra.mxu1 %v3569_v19  ;;  %3294 = vmatprep.subr.bf16.mxu0 %v3583_v30 }
  0x44   : > { %470 = vperm.xlu1 %3554, %v432_v12   ;;  %465 = vperm.xlu0 %3553, %v431_v13  }
  0x45   : > { %743 = vmatprep.subr.bf16.mxu1 %v3570_v20  ;;  %v643_v20 = vlaneseq }
  0x46   : > { %3295 = vmatpush3.bf16.msra.mxu0 %v3583_v30 }
  0x47   : > { %744 = vmatpush1.bf16.msra.mxu1 %v3572_v21  ;;  %3296 = vmatprep.subr.bf16.mxu0 %v3584_v33  ;;  %v644_v23 = vshrl.u32 %v643_v20, 7 }
  0x48   : > { %745 = vmatprep.subr.bf16.mxu1 %v3573_v24 }
  0x49   : > { %v649_v29 = vsub.s32 1, %v644_v23 }
  0x4a   : > { %3297 = vmatpush3.bf16.msra.mxu0 %v3584_v33 }
  0x4b   : > { %746 = vmatpush1.bf16.msra.mxu1 %v3575_v25  ;;  %3298 = vmatprep.subr.bf16.mxu0 %v3585_v34 }
  0x4c   : > { %747 = vmatprep.subr.bf16.mxu1 %v3576_v28 }
  0x4e   : > { %3299 = vmatpush3.bf16.msra.mxu0 %v3585_v34 }
  0x4f   : > { %748 = vmatpush1.bf16.msra.mxu1 %v3578_v32  ;;  %3300 = vmatprep.subr.bf16.mxu0 %v3586_v35 }
  0x52   : > { %3301 = vmatpush3.bf16.msra.mxu0 %v3586_v35 }
  0x55   : > { %3303 = vmatmul.mubr.bf16.vlgmr.msra.gmra.mxu0 %v482_v40 }
  0x56   : > { %3306 = vmatprep.mubr.bf16.mxu0 %v483_v41 }
  0x5d   : > { %3307 = vmatmul.mubr.bf16.gmra.mxu0 %v484_v44 }
  0xb3   : > { %v436_v45 = vpop.permute.xlu0 %435  ;;  %v446_v46 = vpop.permute.xlu1 %445 }
  0xb4   : > { %v473_v48 = vmul.f32 %v436_v45, %v417_v26  ;;  %v475_v52 = vmul.f32 %v446_v46, %v419_v36  ;;  %v645_v26 = vsub.s32 0, %v644_v23 }
  0xb7   : > { %v441_v47 = vpop.permute.xlu0 %440  ;;  %v451_v51 = vpop.permute.xlu1 %450 }
  0xb8   : > { %v474_v49 = vmul.f32 %v441_v47, %v418_v27  ;;  %v476_v53 = vmul.f32 %v451_v51, %v420_v37  ;;  %v641_v27 = vld [vmem:[%s4808_s6] sm:$0x3] }
  0xb9   : > { %v646_v31 = vrot.slane %v641_v27, %v645_v26  ;;  %v650_v33 = vrot.slane %v641_v27, %v649_v29 }
  0xba   : > { %v485_v50 = vpack.c.bf16 %v474_v49, %v473_v48  ;;  %v486_v54 = vpack.c.bf16 %v476_v53, %v475_v52 }
  0xbb   : > { %v461_v55 = vpop.permute.xlu1 %460  ;;  %v456_v56 = vpop.permute.xlu0 %455 }
  0xbc   : > { %766 = vmatmul.mubr.bf16.vlgmr.msra.gmra.mxu1 %v485_v50  ;;  %v478_v57 = vmul.f32 %v461_v55, %v422_v38  ;;  %v477_v58 = vmul.f32 %v456_v56, %v421_v39 }
  0xbd   : > { %775 = vmatprep.mubr.bf16.mxu1 %v3800_v0 }
  0xbe   : > { %v487_v59 = vpack.c.bf16 %v478_v57, %v477_v58 }
  0xbf   : > { %v471_v60 = vpop.permute.xlu1 %470  ;;  %v466_v61 = vpop.permute.xlu0 %465 }
  0xc0   : > { %v480_v62 = vmul.f32 %v471_v60, %v424_v42  ;;  %v479_v63 = vmul.f32 %v466_v61, %v423_v43 }
  0xc2   : > { %v488_v1 = vpack.c.bf16 %v480_v62, %v479_v63 }
  0xc4   : > { %776 = vmatmul.mubr.bf16.gmra.mxu1 %v486_v54 }
  0xc5   : > { %785 = vmatprep.mubr.bf16.mxu1 %v3800_v0 }
  0xcc   : > { %786 = vmatmul.mubr.bf16.gmra.mxu1 %v487_v59 }
  0xcd   : > { %795 = vmatprep.mubr.bf16.mxu1 %v3800_v0 }
  0xd4   : > { %796 = vmatmul.mubr.bf16.gmra.mxu1 %v488_v1 }
 0x115   : > { %v3304_v3 = vpop.f32.mrf.mxu0 }
 0x116   : > { %v4062_v4 = vadd.f32 %v3304_v3, %v4059_v2 }
 0x117   : > { %v594_v5 = vpop.f32.mrf.mxu0 }
 0x118   : > { %v595_v7 = vadd.f32 %v4059_v2, %v594_v5 }
 0x119   : > { %v3305_v6 = vpop.f32.mrf.mxu0 }
 0x11a   : > { %v4066_v8 = vadd.f32 %v3305_v6, %v4059_v2 }
 0x11b   : > { %v597_v0 = vpop.f32.mrf.mxu0 }
 0x11c   : > { %v807_v9 = vpack.c.bf16 %v4066_v8, %v4062_v4  ;;  %v598_v10 = vadd.f32 %v4059_v2, %v597_v0 }
 0x11d   : > { %v3308_v56 = vpop.f32.mrf.mxu0 }
 0x11e   : > { %v806_v11 = vpack.c.bf16 %v598_v10, %v595_v7  ;;  %v619_v5 = vadd.f32 %v3308_v56, %v4059_v2 }
 0x11f   : > { %v610_v59 = vpop.f32.mrf.mxu0 }
 0x120   : > { %3318 = vmatprep.mubr.bf16.mxu0 %v806_v11  ;;  %v611_v63 = vadd.f32 %v4059_v2, %v610_v59 }
 0x121   : > { %v3309_v61 = vpop.f32.mrf.mxu0 }
 0x122   : > { %v622_v6 = vadd.f32 %v3309_v61, %v4059_v2 }
 0x123   : > { %v613_v62 = vpop.f32.mrf.mxu0 }
 0x124   : > { %v614_v1 = vadd.f32 %v4059_v2, %v613_v62  ;;  %v809_v7 = vpack.c.bf16 %v622_v6, %v619_v5 }
 0x126   : > { %v808_v3 = vpack.c.bf16 %v614_v1, %v611_v63 }
 0x17c   : > { %v767_v12 = vpop.f32.mrf.mxu1 }
 0x17d   : > { %v768_v58 = vadd.f32 %v767_v12, %v646_v31 }
 0x17e   : > { %v769_v13 = vpop.f32.mrf.mxu1 }
 0x17f   : > { %v770_v53 = vadd.f32 %v769_v13, %v650_v33 }
 0x180   : > { %v771_v14 = vpop.f32.mrf.mxu1 }
 0x181   : > { %v772_v57 = vadd.f32 %v771_v14, %v646_v31 }
 0x182   : > { %v773_v15 = vpop.f32.mrf.mxu1 }
 0x183   : > { %v774_v50 = vadd.f32 %v773_v15, %v650_v33  ;;  %v810_v60 = vpack.c.bf16 %v772_v57, %v768_v58 }
 0x184   : > { %v777_v16 = vpop.f32.mrf.mxu1 }
 0x185   : > { %v778_v51 = vadd.f32 %v777_v16, %v646_v31  ;;  %v980_v55 = vpack.c.bf16 %v774_v50, %v770_v53 }
 0x186   : > { %v779_v17 = vpop.f32.mrf.mxu1 }
 0x187   : > { %v780_v48 = vadd.f32 %v779_v17, %v650_v33 }
 0x188   : > { %v781_v18 = vpop.f32.mrf.mxu1 }
 0x189   : > { %v782_v49 = vadd.f32 %v781_v18, %v646_v31 }
 0x18a   : > { %v783_v19 = vpop.f32.mrf.mxu1 }
 0x18b   : > { %v784_v46 = vadd.f32 %v783_v19, %v650_v33  ;;  %v811_v54 = vpack.c.bf16 %v782_v49, %v778_v51 }
 0x18c   : > { %v787_v21 = vpop.f32.mrf.mxu1 }
 0x18d   : > { %v788_v37 = vadd.f32 %v787_v21, %v646_v31  ;;  %v981_v52 = vpack.c.bf16 %v784_v46, %v780_v48 }
 0x18e   : > { %v789_v22 = vpop.f32.mrf.mxu1 }
 0x18f   : > { %v790_v43 = vadd.f32 %v789_v22, %v650_v33 }
 0x190   : > { %v791_v24 = vpop.f32.mrf.mxu1 }
 0x191   : > { %v792_v34 = vadd.f32 %v791_v24, %v646_v31 }
 0x192   : > { %v793_v25 = vpop.f32.mrf.mxu1 }
 0x193   : > { %v794_v39 = vadd.f32 %v793_v25, %v650_v33  ;;  %v812_v44 = vpack.c.bf16 %v792_v34, %v788_v37 }
 0x194   : > { %v797_v28 = vpop.f32.mrf.mxu1 }
 0x195   : > { %v798_v35 = vadd.f32 %v797_v28, %v646_v31  ;;  %v982_v47 = vpack.c.bf16 %v794_v39, %v790_v43 }
 0x196   : > { %v799_v30 = vpop.f32.mrf.mxu1 }
 0x197   : > { %v800_v40 = vadd.f32 %v799_v30, %v650_v33 }
 0x198   : > { %v801_v32 = vpop.f32.mrf.mxu1 }
 0x199   : > { %v802_v36 = vadd.f32 %v801_v32, %v646_v31 }
 0x19a   : > { %v803_v38 = vpop.f32.mrf.mxu1 }
 0x19b   : > { %v813_v41 = vpack.c.bf16 %v802_v36, %v798_v35  ;;  %v804_v42 = vadd.f32 %v803_v38, %v650_v33 }
 0x19d   : > { %v983_v45 = vpack.c.bf16 %v804_v42, %v800_v40  ;;  %3310 = vmatprep.subr.bf16.mxu0 %v813_v41 }
 0x19e   : > { %3311 = vmatpush3.bf16.xpose.msra.mxu0 %v813_v41 }
 0x19f   : > { %3312 = vmatprep.subr.bf16.mxu0 %v812_v44  ;;  %3326 = vmatprep.subr.bf16.mxu1 %v983_v45 }
 0x1a0   : > { %3327 = vmatpush3.bf16.msra.mxu1 %v983_v45 }
 0x1a1   : > { %3328 = vmatprep.subr.bf16.mxu1 %v982_v47 }
 0x1a4   : > { %3329 = vmatpush3.bf16.msra.mxu1 %v982_v47 }
 0x1a5   : > { %3330 = vmatprep.subr.bf16.mxu1 %v981_v52 }
 0x1a6   : > { %3313 = vmatpush3.bf16.xpose.msra.mxu0 %v812_v44 }
 0x1a7   : > { %3314 = vmatprep.subr.bf16.mxu0 %v811_v54 }
 0x1a8   : > { %3331 = vmatpush3.bf16.msra.mxu1 %v981_v52 }
 0x1a9   : > { %3332 = vmatprep.subr.bf16.mxu1 %v980_v55 }
 0x1ac   : > { %3333 = vmatpush3.bf16.msra.mxu1 %v980_v55 }
 0x1ae   : > { %3315 = vmatpush3.bf16.xpose.msra.mxu0 %v811_v54 }
 0x1af   : > { %3316 = vmatprep.subr.bf16.mxu0 %v810_v60 }
 0x1b6   : > { %3317 = vmatpush3.bf16.xpose.msra.mxu0 %v810_v60 }
 0x1bd   : > { %3319 = vmatmul.mubr.bf16.vlgmr.msra.gmra.mxu0 %v807_v9 }
 0x1be   : > { %3322 = vmatprep.mubr.bf16.mxu0 %v808_v3 }
 0x1c5   : > { %3323 = vmatmul.mubr.bf16.gmra.mxu0 %v809_v7 }
 0x27d   : > { %v3320_v0 = vpop.f32.mrf.mxu0 }
 0x27e   : > { %v881_v13 = vmul.f32 0.088388346, %v3320_v0 }
 0x27f   : > { %v848_v10 = vpop.f32.mrf.mxu0 }
 0x280   : > { %v879_v11 = vmul.f32 0.088388346, %v848_v10  ;;  %v894_v9 = vsel %vm887_vm0, %v881_v13, -inf }
 0x281   : > { %v3321_v12 = vpop.f32.mrf.mxu0 }
 0x282   : > { %v888_v14 = vsel %vm887_vm0, %v879_v11, -inf  ;;  %v882_v8 = vmul.f32 0.088388346, %v3321_v12 }
 0x283   : > { %889 = vmax.xlane.f32.xlu0 %v888_v14  ;;  %v851_v15 = vpop.f32.mrf.mxu0 }
 0x284   : > { %v880_v16 = vmul.f32 0.088388346, %v851_v15  ;;  %v897_v21 = vsel %vm887_vm0, %v882_v8, -inf }
 0x285   : > { %v3324_v4 = vpop.f32.mrf.mxu0 }
 0x286   : > { %v891_v17 = vsel %vm887_vm0, %v880_v16, -inf  ;;  %v885_v20 = vmul.f32 0.088388346, %v3324_v4 }
 0x287   : > { %895 = vmax.xlane.f32.xlu0 %v894_v9  ;;  %892 = vmax.xlane.f32.xlu1 %v891_v17  ;;  %v864_v2 = vpop.f32.mrf.mxu0 }
 0x288   : > { %v883_v18 = vmul.f32 0.088388346, %v864_v2  ;;  %v906_v26 = vsel %vm887_vm0, %v885_v20, -inf }
 0x289   : > { %v3325_v19 = vpop.f32.mrf.mxu0 }
 0x28a   : > { %v900_v22 = vsel %vm887_vm0, %v883_v18, -inf  ;;  %v886_v25 = vmul.f32 0.088388346, %v3325_v19 }
 0x28b   : > { %898 = vmax.xlane.f32.xlu0 %v897_v21  ;;  %901 = vmax.xlane.f32.xlu1 %v900_v22  ;;  %v867_v23 = vpop.f32.mrf.mxu0 }
 0x28c   : > { %v884_v24 = vmul.f32 0.088388346, %v867_v23  ;;  %v909_v28 = vsel %vm887_vm0, %v886_v25, -inf }
 0x28e   : > { %v903_v27 = vsel %vm887_vm0, %v884_v24, -inf }
 0x28f   : > { %907 = vmax.xlane.f32.xlu1 %v906_v26  ;;  %904 = vmax.xlane.f32.xlu0 %v903_v27 }
 0x293   : > { %910 = vmax.xlane.f32.xlu0 %v909_v28 }
 0x30c   : > { %v890_v29 = vpop.xlane.xlu0 %889 }
 0x30d   : > { %v912_v30 = vsub.f32 %v879_v11, %v890_v29 }
 0x30f   : > { %v920_v31 = vmul.f32 1.442695, %v912_v30 }
 0x310   : > { %v896_v32 = vpop.xlane.xlu0 %895  ;;  %v893_v33 = vpop.xlane.xlu1 %892 }
 0x311   : > { %3655 = vpow2.f32 %v920_v31  ;;  %v914_v34 = vsub.f32 %v881_v13, %v896_v32  ;;  %v913_v35 = vsub.f32 %v880_v16, %v893_v33  ;;  %v3591_v33 = vld [vmem:[%s4809_s7] sm:$0xff]  }
 0x312   : > { %3350 = vmatprep.mubr.msk.bf16.mxu0 %vm887_vm0, %v3591_v33  ;;  %v3639_v33 = vld [vmem:[%s4809_s7 + $0xc0] sm:$0xff]  }
 0x313   : > { %v924_v36 = vmul.f32 1.442695, %v914_v34  ;;  %v922_v37 = vmul.f32 1.442695, %v913_v35  ;;  %v3592_v34 = vld [vmem:[%s4809_s7 + $0x100] sm:$0xff]  }
 0x314   : > { %v899_v38 = vpop.xlane.xlu0 %898  ;;  %v902_v39 = vpop.xlane.xlu1 %901 }
 0x315   : > { %3657 = vpow2.f32 %v924_v36  ;;  %v915_v40 = vsub.f32 %v882_v8, %v899_v38  ;;  %v916_v41 = vsub.f32 %v883_v18, %v902_v39 }
 0x316   : > { %3659 = vpow2.f32 %v922_v37 }
 0x317   : > { %v926_v42 = vmul.f32 1.442695, %v915_v40  ;;  %v928_v43 = vmul.f32 1.442695, %v916_v41 }
 0x318   : > { %v908_v44 = vpop.xlane.xlu1 %907  ;;  %v905_v45 = vpop.xlane.xlu0 %904 }
 0x319   : > { %3661 = vpow2.f32 %v926_v42  ;;  %v918_v46 = vsub.f32 %v885_v20, %v908_v44  ;;  %v917_v47 = vsub.f32 %v884_v24, %v905_v45 }
 0x31a   : > { %3663 = vpow2.f32 %v928_v43 }
 0x31b   : > { %v932_v48 = vmul.f32 1.442695, %v918_v46  ;;  %v930_v49 = vmul.f32 1.442695, %v917_v47 }
 0x31c   : > { %v911_v50 = vpop.xlane.xlu0 %910 }
 0x31d   : > { %3665 = vpow2.f32 %v932_v48  ;;  %v919_v51 = vsub.f32 %v886_v25, %v911_v50 }
 0x31e   : > { %v3656_v52 = vpop.eup %3655  ;;  %3667 = vpow2.f32 %v930_v49 }
 0x31f   : > { %v934_v53 = vmul.f32 1.442695, %v919_v51  ;;  %v936_v54 = vsel %vm887_vm0, %v3656_v52, 0.0  ;;  %v3593_v51 = vld [vmem:[%s4809_s7 + $0x8] sm:$0xff]  }
 0x320   : > { %937 = vadd.xlane.f32.xlu1 %v936_v54  ;;  %v3596_v54 = vld [vmem:[%s4809_s7 + $0x110] sm:$0xff]  }
 0x321   : > { %3669 = vpow2.f32 %v934_v53  ;;  %v3595_v53 = vld [vmem:[%s4809_s7 + $0x10] sm:$0xff]  }
 0x322   : > { %v3658_v55 = vpop.eup %3657 }
 0x323   : > { %v3660_v56 = vpop.eup %3659  ;;  %v942_v57 = vsel %vm887_vm0, %v3658_v55, 0.0 }
 0x324   : > { %943 = vadd.xlane.f32.xlu1 %v942_v57  ;;  %v939_v58 = vsel %vm887_vm0, %v3660_v56, 0.0  ;;  %v3599_v57 = vld [vmem:[%s4809_s7 + $0x20] sm:$0xff]  }
 0x325   : > { %940 = vadd.xlane.f32.xlu0 %v939_v58  ;;  %v3600_v58 = vld [vmem:[%s4809_s7 + $0x120] sm:$0xff]  }
 0x326   : > { %v3662_v59 = vpop.eup %3661 }
 0x327   : > { %v3664_v60 = vpop.eup %3663  ;;  %v945_v61 = vsel %vm887_vm0, %v3662_v59, 0.0 }
 0x328   : > { %v948_v62 = vsel %vm887_vm0, %v3664_v60, 0.0 }
 0x329   : > { %949 = vadd.xlane.f32.xlu1 %v948_v62  ;;  %946 = vadd.xlane.f32.xlu0 %v945_v61  ;;  %v3603_v61 = vld [vmem:[%s4809_s7 + $0x30] sm:$0xff]  }
 0x32a   : > { %v3666_v63 = vpop.eup %3665  ;;  %v3604_v62 = vld [vmem:[%s4809_s7 + $0x130] sm:$0xff]  }
 0x32b   : > { %v3668_v1 = vpop.eup %3667  ;;  %v954_v3 = vsel %vm887_vm0, %v3666_v63, 0.0 }
 0x32c   : > { %v951_v5 = vsel %vm887_vm0, %v3668_v1, 0.0 }
 0x32d   : > { %955 = vadd.xlane.f32.xlu1 %v954_v3  ;;  %952 = vadd.xlane.f32.xlu0 %v951_v5  ;;  %v3607_v3 = vld [vmem:[%s4809_s7 + $0x40] sm:$0xff]  }
 0x32e   : > { %v3670_v6 = vpop.eup %3669  ;;  %v3608_v5 = vld [vmem:[%s4809_s7 + $0x140] sm:$0xff]  }
 0x32f   : > { %v957_v7 = vsel %vm887_vm0, %v3670_v6, 0.0 }
 0x331   : > { %958 = vadd.xlane.f32.xlu0 %v957_v7  ;;  %v3610_v7 = vld [vmem:[%s4809_s7 + $0x148] sm:$0xff]  }
 0x3a9   : > { %v938_v0 = vpop.xlane.xlu1 %937 }
 0x3aa   : > { %3671 = vrcp.f32 %v938_v0  ;;  %v3611_v0 = vld [vmem:[%s4809_s7 + $0x50] sm:$0xff]  }
 0x3ad   : > { %v944_v10 = vpop.xlane.xlu1 %943 }
 0x3ae   : > { %v941_v11 = vpop.xlane.xlu0 %940 }
 0x3af   : > { %3673 = vrcp.f32 %v941_v11  ;;  %v3613_v11 = vld [vmem:[%s4809_s7 + $0x58] sm:$0xff]  }
 0x3b0   : > { %3675 = vrcp.f32 %v944_v10  ;;  %v3612_v10 = vld [vmem:[%s4809_s7 + $0x150] sm:$0xff]  }
 0x3b2   : > { %v950_v12 = vpop.xlane.xlu1 %949  ;;  %v947_v13 = vpop.xlane.xlu0 %946 }
 0x3b3   : > { %3677 = vrcp.f32 %v947_v13  ;;  %v3615_v13 = vld [vmem:[%s4809_s7 + $0x60] sm:$0xff]  }
 0x3b4   : > { %3679 = vrcp.f32 %v950_v12  ;;  %v3614_v12 = vld [vmem:[%s4809_s7 + $0x158] sm:$0xff]  }
 0x3b6   : > { %v956_v14 = vpop.xlane.xlu1 %955  ;;  %v953_v15 = vpop.xlane.xlu0 %952 }
 0x3b7   : > { %3681 = vrcp.f32 %v953_v15  ;;  %v3672_v16 = vpop.eup %3671  ;;  %v3617_v15 = vld [vmem:[%s4809_s7 + $0x68] sm:$0xff]  }
 0x3b8   : > { %3683 = vrcp.f32 %v956_v14  ;;  %v961_v9 = vmul.f32 %v3672_v16, %v3656_v52  ;;  %v3594_v52 = vld [vmem:[%s4809_s7 + $0x108] sm:$0xff]   ;;  %v3616_v14 = vld [vmem:[%s4809_s7 + $0x160] sm:$0xff]  }
 0x3b9   : > { %v3618_v16 = vld [vmem:[%s4809_s7 + $0x168] sm:$0xff]  }
 0x3ba   : > { %v959_v4 = vpop.xlane.xlu0 %958 }
 0x3bb   : > { %3685 = vrcp.f32 %v959_v4  ;;  %v3619_v4 = vld [vmem:[%s4809_s7 + $0x70] sm:$0xff]  }
 0x3bc   : > { %v3674_v8 = vpop.eup %3673 }
 0x3bd   : > { %v963_v17 = vmul.f32 %v3674_v8, %v3660_v56  ;;  %v3676_v2 = vpop.eup %3675  ;;  %v3598_v56 = vld [vmem:[%s4809_s7 + $0x118] sm:$0xff]   ;;  %v3620_v8 = vld [vmem:[%s4809_s7 + $0x170] sm:$0xff]  }
 0x3be   : > { %v965_v20 = vmul.f32 %v3676_v2, %v3658_v55  ;;  %v3597_v55 = vld [vmem:[%s4809_s7 + $0x18] sm:$0xff]   ;;  %v3623_v2 = vld [vmem:[%s4809_s7 + $0x80] sm:$0xff]  }
 0x3bf   : > { %v976_v18 = vpack.c.bf16 %v963_v17, %v961_v9  ;;  %v3621_v9 = vld [vmem:[%s4809_s7 + $0x78] sm:$0xff]  }
 0x3c0   : > { %v3678_v19 = vpop.eup %3677  ;;  %v3622_v17 = vld [vmem:[%s4809_s7 + $0x178] sm:$0xff]  }
 0x3c1   : > { %3334 = vmatprep.mubr.msk.bf16.mxu1 %vm887_vm0, %v976_v18  ;;  %v967_v21 = vmul.f32 %v3678_v19, %v3662_v59  ;;  %v3680_v22 = vpop.eup %3679  ;;  %v3601_v59 = vld [vmem:[%s4809_s7 + $0x28] sm:$0xff]   ;;  %v3624_v18 = vld [vmem:[%s4809_s7 + $0x180] sm:$0xff]  }
 0x3c2   : > { %v969_v26 = vmul.f32 %v3680_v22, %v3664_v60  ;;  %v3602_v60 = vld [vmem:[%s4809_s7 + $0x128] sm:$0xff]   ;;  %v3628_v22 = vld [vmem:[%s4809_s7 + $0x190] sm:$0xff]  }
 0x3c3   : > { %v977_v23 = vpack.c.bf16 %v967_v21, %v965_v20  ;;  %v3625_v19 = vld [vmem:[%s4809_s7 + $0x88] sm:$0xff]   ;;  %v3627_v21 = vld [vmem:[%s4809_s7 + $0x90] sm:$0xff]  }
 0x3c4   : > { %v3682_v24 = vpop.eup %3681  ;;  %v3626_v20 = vld [vmem:[%s4809_s7 + $0x188] sm:$0xff]  }
 0x3c5   : > { %v3684_v25 = vpop.eup %3683  ;;  %3335 = vmatmul.mubr.msk.bf16.vlgmr.msra.gmra.mxu1 %vm887_vm0, %v977_v23  ;;  %v971_v27 = vmul.f32 %v3682_v24, %v3668_v1  ;;  %v3606_v1 = vld [vmem:[%s4809_s7 + $0x138] sm:$0xff]  }
 0x3c6   : > { %v973_v30 = vmul.f32 %v3684_v25, %v3666_v63  ;;  %v3605_v63 = vld [vmem:[%s4809_s7 + $0x38] sm:$0xff]   ;;  %v3631_v25 = vld [vmem:[%s4809_s7 + $0xa0] sm:$0xff]  }
 0x3c7   : > { %v978_v29 = vpack.c.bf16 %v971_v27, %v969_v26  ;;  %v3629_v23 = vld [vmem:[%s4809_s7 + $0x98] sm:$0xff]   ;;  %v3632_v26 = vld [vmem:[%s4809_s7 + $0x1a0] sm:$0xff]   ;;  %v3633_v27 = vld [vmem:[%s4809_s7 + $0xa8] sm:$0xff]  }
 0x3c8   : > { %v3686_v28 = vpop.eup %3685  ;;  %v3630_v24 = vld [vmem:[%s4809_s7 + $0x198] sm:$0xff]  }
 0x3c9   : > { %v975_v31 = vmul.f32 %v3686_v28, %v3670_v6  ;;  %3338 = vmatprep.mubr.msk.bf16.mxu1 %vm887_vm0, %v978_v29  ;;  %v3609_v6 = vld [vmem:[%s4809_s7 + $0x48] sm:$0xff]   ;;  %v3635_v29 = vld [vmem:[%s4809_s7 + $0xb0] sm:$0xff]  }
 0x3ca   : > { %v3634_v28 = vld [vmem:[%s4809_s7 + $0x1a8] sm:$0xff]  }
 0x3cb   : > { %v979_v32 = vpack.c.bf16 %v975_v31, %v973_v30  ;;  %v3636_v30 = vld [vmem:[%s4809_s7 + $0x1b0] sm:$0xff]   ;;  %v3637_v31 = vld [vmem:[%s4809_s7 + $0xb8] sm:$0xff]  }
 0x3cd   : > { %3339 = vmatmul.mubr.msk.bf16.gmra.mxu1 %vm887_vm0, %v979_v32  ;;  %v3638_v32 = vld [vmem:[%s4809_s7 + $0x1b8] sm:$0xff]  }
 0x3ce   : > { %3414 = vmatprep.mubr.msk.bf16.mxu1 %vm887_vm0, %v3592_v34  ;;  %v3640_v34 = vld [vmem:[%s4809_s7 + $0x1c0] sm:$0xff]  }
 0x485   : > { %v3336_v35 = vpop.f32.mrf.mxu1 }
 0x487   : > { %v1030_v36 = vpop.f32.mrf.mxu1 }
 0x489   : > { %v3337_v37 = vpop.f32.mrf.mxu1 }
 0x48a   : > { %v3175_v38 = vpack.c.bf16 %v3337_v37, %v3336_v35  ;;  %v3641_v35 = vld [vmem:[%s4809_s7 + $0xc8] sm:$0xff]   ;;  %v3643_v37 = vld [vmem:[%s4809_s7 + $0xd0] sm:$0xff]  }
 0x48b   : > { %v1033_v39 = vpop.f32.mrf.mxu1 }
 0x48c   : > { %3187 = vst [vmem:[#allocation2 + $0x8] sm:$0xff] %v3175_v38   ;;  %v3170_v40 = vpack.c.bf16 %v1033_v39, %v1030_v36  ;;  %v3642_v36 = vld [vmem:[%s4809_s7 + $0x1c8] sm:$0xff]   ;;  %v3644_v38 = vld [vmem:[%s4809_s7 + $0x1d0] sm:$0xff]   ;;  %v3645_v39 = vld [vmem:[%s4809_s7 + $0xd8] sm:$0xff]  }
 0x48d   : > { %v3340_v41 = vpop.f32.mrf.mxu1 }
 0x48e   : > { %3171 = vst [vmem:[#allocation2] sm:$0xff] %v3170_v40   ;;  %v3646_v40 = vld [vmem:[%s4809_s7 + $0x1d8] sm:$0xff]  }
 0x48f   : > { %v1046_v42 = vpop.f32.mrf.mxu1 }
 0x491   : > { %v3341_v43 = vpop.f32.mrf.mxu1 }
 0x492   : > { %v3185_v44 = vpack.c.bf16 %v3341_v43, %v3340_v41  ;;  %v3647_v41 = vld [vmem:[%s4809_s7 + $0xe0] sm:$0xff]   ;;  %v3649_v43 = vld [vmem:[%s4809_s7 + $0xe8] sm:$0xff]  }
 0x493   : > { %v1049_v45 = vpop.f32.mrf.mxu1  ;;  %v3589_v49 = vld [vmem:[#allocation2 + $0x8] sm:$0xff]  }
 0x494   : > { %3189 = vst [vmem:[#allocation2 + $0x18] sm:$0xff] %v3185_v44   ;;  %v3180_v46 = vpack.c.bf16 %v1049_v45, %v1046_v42  ;;  %v3648_v42 = vld [vmem:[%s4809_s7 + $0x1e0] sm:$0xff]   ;;  %v3650_v44 = vld [vmem:[%s4809_s7 + $0x1e8] sm:$0xff]   ;;  %v3651_v45 = vld [vmem:[%s4809_s7 + $0xf0] sm:$0xff]  }
 0x495   : > { %v3590_v50 = vld [vmem:[#allocation2] sm:$0xff]  }
 0x496   : > { %3188 = vst [vmem:[#allocation2 + $0x10] sm:$0xff] %v3180_v46   ;;  %v3652_v46 = vld [vmem:[%s4809_s7 + $0x1f0] sm:$0xff]  }
 0x49b   : > { %v3587_v47 = vld [vmem:[#allocation2 + $0x18] sm:$0xff]  }
 0x49c   : > { %3342 = vmatprep.subr.bf16.mxu0 %v3587_v47  ;;  %3478 = vmatprep.subr.bf16.mxu1 %v3587_v47 }
 0x49d   : > { %v3588_v48 = vld [vmem:[#allocation2 + $0x10] sm:$0xff]   ;;  %3343 = vmatpush3.bf16.msra.mxu0 %v3587_v47  ;;  %3482 = vmatpush3.bf16.msra.mxu1 %v3587_v47  ;;  %v3653_v47 = vld [vmem:[%s4809_s7 + $0xf8] sm:$0xff]  }
 0x49e   : > { %3344 = vmatprep.subr.bf16.mxu0 %v3588_v48  ;;  %3479 = vmatprep.subr.bf16.mxu1 %v3588_v48 }
 0x4a1   : > { %3345 = vmatpush3.bf16.msra.mxu0 %v3588_v48  ;;  %3483 = vmatpush3.bf16.msra.mxu1 %v3588_v48  ;;  %v3654_v48 = vld [vmem:[%s4809_s7 + $0x1f8] sm:$0xff]  }
 0x4a2   : > { %3346 = vmatprep.subr.bf16.mxu0 %v3589_v49  ;;  %3480 = vmatprep.subr.bf16.mxu1 %v3589_v49 }
 0x4a5   : > { %3347 = vmatpush3.bf16.msra.mxu0 %v3589_v49  ;;  %3484 = vmatpush3.bf16.msra.mxu1 %v3589_v49  ;;  %v4357_v49 = vstv %s2324_s8 }
 0x4a6   : > { %3348 = vmatprep.subr.bf16.mxu0 %v3590_v50  ;;  %3481 = vmatprep.subr.bf16.mxu1 %v3590_v50 }
 0x4a9   : > { %3349 = vmatpush3.bf16.msra.mxu0 %v3590_v50  ;;  %3485 = vmatpush3.bf16.msra.mxu1 %v3590_v50 }
 0x4ac   : > { %3351 = vmatmul.mubr.msk.bf16.vlgmr.msra.gmra.mxu0 %vm887_vm0, %v3593_v51  ;;  %3415 = vmatmul.mubr.msk.bf16.vlgmr.msra.gmra.mxu1 %vm887_vm0, %v3594_v52  ;;  %v2456_v51 = vld [vmem:[%s3947_s30 + $0x10] sm:$0xff] }
 0x4ad   : > { %3354 = vmatprep.mubr.msk.bf16.mxu0 %vm887_vm0, %v3595_v53  ;;  %3418 = vmatprep.mubr.msk.bf16.mxu1 %vm887_vm0, %v3596_v54  ;;  %v2520_v53 = vld [vmem:[%s3947_s30 + $0x210] sm:$0xff] }
 0x4b4   : > { %3355 = vmatmul.mubr.msk.bf16.gmra.mxu0 %vm887_vm0, %v3597_v55  ;;  %3419 = vmatmul.mubr.msk.bf16.gmra.mxu1 %vm887_vm0, %v3598_v56 }
 0x4b5   : > { %3358 = vmatprep.mubr.msk.bf16.mxu0 %vm887_vm0, %v3599_v57  ;;  %3422 = vmatprep.mubr.msk.bf16.mxu1 %vm887_vm0, %v3600_v58  ;;  %v2454_v57 = vld [vmem:[%s3947_s30] sm:$0xff] }
 0x4bc   : > { %3359 = vmatmul.mubr.msk.bf16.gmra.mxu0 %vm887_vm0, %v3601_v59  ;;  %3423 = vmatmul.mubr.msk.bf16.gmra.mxu1 %vm887_vm0, %v3602_v60  ;;  %v2518_v59 = vld [vmem:[%s3947_s30 + $0x200] sm:$0xff] }
 0x4bd   : > { %3362 = vmatprep.mubr.msk.bf16.mxu0 %vm887_vm0, %v3603_v61  ;;  %3426 = vmatprep.mubr.msk.bf16.mxu1 %vm887_vm0, %v3604_v62 }
 0x4c4   : > { %3363 = vmatmul.mubr.msk.bf16.gmra.mxu0 %vm887_vm0, %v3605_v63  ;;  %3427 = vmatmul.mubr.msk.bf16.gmra.mxu1 %vm887_vm0, %v3606_v1 }
 0x4c5   : > { %3366 = vmatprep.mubr.msk.bf16.mxu0 %vm887_vm0, %v3607_v3  ;;  %3430 = vmatprep.mubr.msk.bf16.mxu1 %vm887_vm0, %v3608_v5  ;;  %v2457_v3 = vld [vmem:[%s3947_s30 + $0x18] sm:$0xff] }
 0x4cc   : > { %3367 = vmatmul.mubr.msk.bf16.gmra.mxu0 %vm887_vm0, %v3609_v6  ;;  %3431 = vmatmul.mubr.msk.bf16.gmra.mxu1 %vm887_vm0, %v3610_v7  ;;  %v2521_v6 = vld [vmem:[%s3947_s30 + $0x218] sm:$0xff] }
 0x4cd   : > { %3370 = vmatprep.mubr.msk.bf16.mxu0 %vm887_vm0, %v3611_v0  ;;  %3434 = vmatprep.mubr.msk.bf16.mxu1 %vm887_vm0, %v3612_v10 }
 0x4d4   : > { %3371 = vmatmul.mubr.msk.bf16.gmra.mxu0 %vm887_vm0, %v3613_v11  ;;  %3435 = vmatmul.mubr.msk.bf16.gmra.mxu1 %vm887_vm0, %v3614_v12 }
 0x4d5   : > { %3374 = vmatprep.mubr.msk.bf16.mxu0 %vm887_vm0, %v3615_v13  ;;  %3438 = vmatprep.mubr.msk.bf16.mxu1 %vm887_vm0, %v3616_v14  ;;  %v2455_v13 = vld [vmem:[%s3947_s30 + $0x8] sm:$0xff] }
 0x4dc   : > { %3375 = vmatmul.mubr.msk.bf16.gmra.mxu0 %vm887_vm0, %v3617_v15  ;;  %3439 = vmatmul.mubr.msk.bf16.gmra.mxu1 %vm887_vm0, %v3618_v16  ;;  %v2519_v15 = vld [vmem:[%s3947_s30 + $0x208] sm:$0xff] }
 0x4dd   : > { %3378 = vmatprep.mubr.msk.bf16.mxu0 %vm887_vm0, %v3619_v4  ;;  %3442 = vmatprep.mubr.msk.bf16.mxu1 %vm887_vm0, %v3620_v8 }
 0x4e4   : > { %3379 = vmatmul.mubr.msk.bf16.gmra.mxu0 %vm887_vm0, %v3621_v9  ;;  %3443 = vmatmul.mubr.msk.bf16.gmra.mxu1 %vm887_vm0, %v3622_v17 }
 0x4e5   : > { %3382 = vmatprep.mubr.msk.bf16.mxu0 %vm887_vm0, %v3623_v2  ;;  %3446 = vmatprep.mubr.msk.bf16.mxu1 %vm887_vm0, %v3624_v18  ;;  %v2460_v2 = vld [vmem:[%s3947_s30 + $0x30] sm:$0xff] }
 0x4ec   : > { %3383 = vmatmul.mubr.msk.bf16.gmra.mxu0 %vm887_vm0, %v3625_v19  ;;  %3447 = vmatmul.mubr.msk.bf16.gmra.mxu1 %vm887_vm0, %v3626_v20  ;;  %v2524_v19 = vld [vmem:[%s3947_s30 + $0x230] sm:$0xff] }
 0x4ed   : > { %3386 = vmatprep.mubr.msk.bf16.mxu0 %vm887_vm0, %v3627_v21  ;;  %3450 = vmatprep.mubr.msk.bf16.mxu1 %vm887_vm0, %v3628_v22 }
 0x4f4   : > { %3387 = vmatmul.mubr.msk.bf16.gmra.mxu0 %vm887_vm0, %v3629_v23  ;;  %3451 = vmatmul.mubr.msk.bf16.gmra.mxu1 %vm887_vm0, %v3630_v24 }
 0x4f5   : > { %3390 = vmatprep.mubr.msk.bf16.mxu0 %vm887_vm0, %v3631_v25  ;;  %3454 = vmatprep.mubr.msk.bf16.mxu1 %vm887_vm0, %v3632_v26  ;;  %v2458_v25 = vld [vmem:[%s3947_s30 + $0x20] sm:$0xff] }
 0x4fc   : > { %3391 = vmatmul.mubr.msk.bf16.gmra.mxu0 %vm887_vm0, %v3633_v27  ;;  %3455 = vmatmul.mubr.msk.bf16.gmra.mxu1 %vm887_vm0, %v3634_v28  ;;  %v2522_v27 = vld [vmem:[%s3947_s30 + $0x220] sm:$0xff] }
 0x4fd   : > { %3394 = vmatprep.mubr.msk.bf16.mxu0 %vm887_vm0, %v3635_v29  ;;  %3458 = vmatprep.mubr.msk.bf16.mxu1 %vm887_vm0, %v3636_v30 }
 0x504   : > { %3395 = vmatmul.mubr.msk.bf16.gmra.mxu0 %vm887_vm0, %v3637_v31  ;;  %3459 = vmatmul.mubr.msk.bf16.gmra.mxu1 %vm887_vm0, %v3638_v32 }
 0x505   : > { %3398 = vmatprep.mubr.msk.bf16.mxu0 %vm887_vm0, %v3639_v33  ;;  %3462 = vmatprep.mubr.msk.bf16.mxu1 %vm887_vm0, %v3640_v34  ;;  %v2461_v33 = vld [vmem:[%s3947_s30 + $0x38] sm:$0xff] }
 0x50c   : > { %3399 = vmatmul.mubr.msk.bf16.gmra.mxu0 %vm887_vm0, %v3641_v35  ;;  %3463 = vmatmul.mubr.msk.bf16.gmra.mxu1 %vm887_vm0, %v3642_v36  ;;  %v2525_v35 = vld [vmem:[%s3947_s30 + $0x238] sm:$0xff] }
 0x50d   : > { %3402 = vmatprep.mubr.msk.bf16.mxu0 %vm887_vm0, %v3643_v37  ;;  %3466 = vmatprep.mubr.msk.bf16.mxu1 %vm887_vm0, %v3644_v38 }
 0x514   : > { %3403 = vmatmul.mubr.msk.bf16.gmra.mxu0 %vm887_vm0, %v3645_v39  ;;  %3467 = vmatmul.mubr.msk.bf16.gmra.mxu1 %vm887_vm0, %v3646_v40 }
 0x515   : > { %3406 = vmatprep.mubr.msk.bf16.mxu0 %vm887_vm0, %v3647_v41  ;;  %3470 = vmatprep.mubr.msk.bf16.mxu1 %vm887_vm0, %v3648_v42  ;;  %v2459_v41 = vld [vmem:[%s3947_s30 + $0x28] sm:$0xff] }
 0x51c   : > { %3407 = vmatmul.mubr.msk.bf16.gmra.mxu0 %vm887_vm0, %v3649_v43  ;;  %3471 = vmatmul.mubr.msk.bf16.gmra.mxu1 %vm887_vm0, %v3650_v44  ;;  %v2523_v43 = vld [vmem:[%s3947_s30 + $0x228] sm:$0xff] }
 0x51d   : > { %3410 = vmatprep.mubr.msk.bf16.mxu0 %vm887_vm0, %v3651_v45  ;;  %3474 = vmatprep.mubr.msk.bf16.mxu1 %vm887_vm0, %v3652_v46 }
 0x524   : > { %3411 = vmatmul.mubr.msk.bf16.gmra.mxu0 %vm887_vm0, %v3653_v47  ;;  %3475 = vmatmul.mubr.msk.bf16.gmra.mxu1 %vm887_vm0, %v3654_v48 }
 0x56c   : > { %v3352_v50 = vpop.f32.mrf.mxu0  ;;  %v3416_v52 = vpop.f32.mrf.mxu1 }
 0x56d   : > { %v2328_v54 = vmul.f32 %v3352_v50, %v4357_v49  ;;  %v2392_v55 = vmul.f32 %v3416_v52, %v4357_v49  ;;  %v2464_v50 = vld [vmem:[%s3947_s30 + $0x50] sm:$0xff] }
 0x56e   : > { %v1813_v56 = vpop.f32.mrf.mxu0  ;;  %v2069_v58 = vpop.f32.mrf.mxu1  ;;  %v2528_v52 = vld [vmem:[%s3947_s30 + $0x250] sm:$0xff] }
 0x56f   : > { %v2584_v60 = vadd.f32 %v2456_v51, %v2328_v54  ;;  %v2648_v61 = vadd.f32 %v2520_v53, %v2392_v55  ;;  %v2326_v62 = vmul.f32 %v4357_v49, %v1813_v56  ;;  %v2390_v63 = vmul.f32 %v4357_v49, %v2069_v58  ;;  %v2462_v58 = vld [vmem:[%s3947_s30 + $0x40] sm:$0xff] }
 0x570   : > { %v3353_v1 = vpop.f32.mrf.mxu0  ;;  %v3417_v5 = vpop.f32.mrf.mxu1 }
 0x571   : > { %2712 = vst [vmem:[%s4371_s27 + $0x10] sm:$0xff] %v2584_v60  ;;  %2776 = vst [vmem:[%s4371_s27 + $0x210] sm:$0xff] %v2648_v61  ;;  %v2582_v7 = vadd.f32 %v2454_v57, %v2326_v62  ;;  %v2646_v0 = vadd.f32 %v2518_v59, %v2390_v63  ;;  %v2329_v10 = vmul.f32 %v3353_v1, %v4357_v49  ;;  %v2526_v60 = vld [vmem:[%s3947_s30 + $0x240] sm:$0xff] }
 0x572   : > { %v2393_v11 = vmul.f32 %v3417_v5, %v4357_v49  ;;  %v1816_v12 = vpop.f32.mrf.mxu0  ;;  %v2072_v14 = vpop.f32.mrf.mxu1  ;;  %v2465_v5 = vld [vmem:[%s3947_s30 + $0x58] sm:$0xff] }
 0x573   : > { %2710 = vst [vmem:[%s4371_s27] sm:$0xff] %v2582_v7  ;;  %2774 = vst [vmem:[%s4371_s27 + $0x200] sm:$0xff] %v2646_v0  ;;  %v2585_v16 = vadd.f32 %v2457_v3, %v2329_v10  ;;  %v2327_v8 = vmul.f32 %v4357_v49, %v1816_v12  ;;  %v2391_v9 = vmul.f32 %v4357_v49, %v2072_v14  ;;  %v2529_v7 = vld [vmem:[%s3947_s30 + $0x258] sm:$0xff]  ;;  %v2463_v14 = vld [vmem:[%s3947_s30 + $0x48] sm:$0xff] }
 0x574   : > { %v2649_v4 = vadd.f32 %v2521_v6, %v2393_v11  ;;  %v3356_v17 = vpop.f32.mrf.mxu0  ;;  %v3420_v18 = vpop.f32.mrf.mxu1 }
 0x575   : > { %2713 = vst [vmem:[%s4371_s27 + $0x18] sm:$0xff] %v2585_v16  ;;  %v2583_v20 = vadd.f32 %v2455_v13, %v2327_v8  ;;  %v2647_v21 = vadd.f32 %v2519_v15, %v2391_v9  ;;  %v2332_v22 = vmul.f32 %v3356_v17, %v4357_v49  ;;  %v2396_v23 = vmul.f32 %v3420_v18, %v4357_v49  ;;  %v2527_v16 = vld [vmem:[%s3947_s30 + $0x248] sm:$0xff]  ;;  %v2468_v18 = vld [vmem:[%s3947_s30 + $0x70] sm:$0xff] }
 0x576   : > { %2777 = vst [vmem:[%s4371_s27 + $0x218] sm:$0xff] %v2649_v4  ;;  %v1829_v24 = vpop.f32.mrf.mxu0  ;;  %v2085_v26 = vpop.f32.mrf.mxu1 }
 0x577   : > { %2711 = vst [vmem:[%s4371_s27 + $0x8] sm:$0xff] %v2583_v20  ;;  %2775 = vst [vmem:[%s4371_s27 + $0x208] sm:$0xff] %v2647_v21  ;;  %v2588_v28 = vadd.f32 %v2460_v2, %v2332_v22  ;;  %v2652_v29 = vadd.f32 %v2524_v19, %v2396_v23  ;;  %v2330_v30 = vmul.f32 %v4357_v49, %v1829_v24  ;;  %v2532_v20 = vld [vmem:[%s3947_s30 + $0x270] sm:$0xff] }
 0x578   : > { %v2394_v31 = vmul.f32 %v4357_v49, %v2085_v26  ;;  %v3357_v32 = vpop.f32.mrf.mxu0  ;;  %v3421_v34 = vpop.f32.mrf.mxu1  ;;  %v2466_v26 = vld [vmem:[%s3947_s30 + $0x60] sm:$0xff] }
 0x579   : > { %2716 = vst [vmem:[%s4371_s27 + $0x30] sm:$0xff] %v2588_v28  ;;  %2780 = vst [vmem:[%s4371_s27 + $0x230] sm:$0xff] %v2652_v29  ;;  %v2586_v36 = vadd.f32 %v2458_v25, %v2330_v30  ;;  %v2333_v38 = vmul.f32 %v3357_v32, %v4357_v49  ;;  %v2397_v39 = vmul.f32 %v3421_v34, %v4357_v49  ;;  %v2530_v28 = vld [vmem:[%s3947_s30 + $0x260] sm:$0xff]  ;;  %v2469_v34 = vld [vmem:[%s3947_s30 + $0x78] sm:$0xff] }
 0x57a   : > { %v2650_v37 = vadd.f32 %v2522_v27, %v2394_v31  ;;  %v1832_v40 = vpop.f32.mrf.mxu0  ;;  %v2088_v42 = vpop.f32.mrf.mxu1 }
 0x57b   : > { %2714 = vst [vmem:[%s4371_s27 + $0x20] sm:$0xff] %v2586_v36  ;;  %v2589_v44 = vadd.f32 %v2461_v33, %v2333_v38  ;;  %v2653_v45 = vadd.f32 %v2525_v35, %v2397_v39  ;;  %v2331_v46 = vmul.f32 %v4357_v49, %v1832_v40  ;;  %v2395_v47 = vmul.f32 %v4357_v49, %v2088_v42  ;;  %v2533_v36 = vld [vmem:[%s3947_s30 + $0x278] sm:$0xff]  ;;  %v2467_v42 = vld [vmem:[%s3947_s30 + $0x68] sm:$0xff] }
 0x57c   : > { %2778 = vst [vmem:[%s4371_s27 + $0x220] sm:$0xff] %v2650_v37  ;;  %v3360_v48 = vpop.f32.mrf.mxu0  ;;  %v3424_v51 = vpop.f32.mrf.mxu1 }
 0x57d   : > { %2717 = vst [vmem:[%s4371_s27 + $0x38] sm:$0xff] %v2589_v44  ;;  %2781 = vst [vmem:[%s4371_s27 + $0x238] sm:$0xff] %v2653_v45  ;;  %v2587_v53 = vadd.f32 %v2459_v41, %v2331_v46  ;;  %v2651_v54 = vadd.f32 %v2523_v43, %v2395_v47  ;;  %v2336_v55 = vmul.f32 %v3360_v48, %v4357_v49  ;;  %v2531_v44 = vld [vmem:[%s3947_s30 + $0x268] sm:$0xff] }
 0x57e   : > { %v2400_v56 = vmul.f32 %v3424_v51, %v4357_v49  ;;  %v1845_v57 = vpop.f32.mrf.mxu0  ;;  %v2101_v59 = vpop.f32.mrf.mxu1  ;;  %v2472_v51 = vld [vmem:[%s3947_s30 + $0x90] sm:$0xff] }
 0x57f   : > { %2715 = vst [vmem:[%s4371_s27 + $0x28] sm:$0xff] %v2587_v53  ;;  %2779 = vst [vmem:[%s4371_s27 + $0x228] sm:$0xff] %v2651_v54  ;;  %v2592_v61 = vadd.f32 %v2464_v50, %v2336_v55  ;;  %v2334_v63 = vmul.f32 %v4357_v49, %v1845_v57  ;;  %v2398_v1 = vmul.f32 %v4357_v49, %v2101_v59  ;;  %v2536_v53 = vld [vmem:[%s3947_s30 + $0x290] sm:$0xff]  ;;  %v2470_v59 = vld [vmem:[%s3947_s30 + $0x80] sm:$0xff] }
 0x580   : > { %v2656_v62 = vadd.f32 %v2528_v52, %v2400_v56  ;;  %v3361_v3 = vpop.f32.mrf.mxu0  ;;  %v3425_v6 = vpop.f32.mrf.mxu1 }
 0x581   : > { %2720 = vst [vmem:[%s4371_s27 + $0x50] sm:$0xff] %v2592_v61  ;;  %v2590_v0 = vadd.f32 %v2462_v58, %v2334_v63  ;;  %v2654_v10 = vadd.f32 %v2526_v60, %v2398_v1  ;;  %v2337_v11 = vmul.f32 %v3361_v3, %v4357_v49  ;;  %v2401_v12 = vmul.f32 %v3425_v6, %v4357_v49  ;;  %v2534_v61 = vld [vmem:[%s3947_s30 + $0x280] sm:$0xff]  ;;  %v2473_v6 = vld [vmem:[%s3947_s30 + $0x98] sm:$0xff] }
 0x582   : > { %2784 = vst [vmem:[%s4371_s27 + $0x250] sm:$0xff] %v2656_v62  ;;  %v1848_v13 = vpop.f32.mrf.mxu0  ;;  %v2104_v15 = vpop.f32.mrf.mxu1 }
 0x583   : > { %2718 = vst [vmem:[%s4371_s27 + $0x40] sm:$0xff] %v2590_v0  ;;  %2782 = vst [vmem:[%s4371_s27 + $0x240] sm:$0xff] %v2654_v10  ;;  %v2593_v4 = vadd.f32 %v2465_v5, %v2337_v11  ;;  %v2657_v8 = vadd.f32 %v2529_v7, %v2401_v12  ;;  %v2335_v9 = vmul.f32 %v4357_v49, %v1848_v13  ;;  %v2537_v0 = vld [vmem:[%s3947_s30 + $0x298] sm:$0xff] }
 0x584   : > { %v2399_v17 = vmul.f32 %v4357_v49, %v2104_v15  ;;  %v3364_v2 = vpop.f32.mrf.mxu0  ;;  %v3428_v19 = vpop.f32.mrf.mxu1  ;;  %v2471_v15 = vld [vmem:[%s3947_s30 + $0x88] sm:$0xff] }
 0x585   : > { %2721 = vst [vmem:[%s4371_s27 + $0x58] sm:$0xff] %v2593_v4  ;;  %2785 = vst [vmem:[%s4371_s27 + $0x258] sm:$0xff] %v2657_v8  ;;  %v2591_v21 = vadd.f32 %v2463_v14, %v2335_v9  ;;  %v2340_v23 = vmul.f32 %v3364_v2, %v4357_v49  ;;  %v2404_v24 = vmul.f32 %v3428_v19, %v4357_v49  ;;  %v2535_v4 = vld [vmem:[%s3947_s30 + $0x288] sm:$0xff]  ;;  %v2476_v19 = vld [vmem:[%s3947_s30 + $0xb0] sm:$0xff] }
 0x586   : > { %v2655_v22 = vadd.f32 %v2527_v16, %v2399_v17  ;;  %v1861_v25 = vpop.f32.mrf.mxu0  ;;  %v2117_v27 = vpop.f32.mrf.mxu1 }
 0x587   : > { %2719 = vst [vmem:[%s4371_s27 + $0x48] sm:$0xff] %v2591_v21  ;;  %v2596_v29 = vadd.f32 %v2468_v18, %v2340_v23  ;;  %v2660_v30 = vadd.f32 %v2532_v20, %v2404_v24  ;;  %v2338_v31 = vmul.f32 %v4357_v49, %v1861_v25  ;;  %v2402_v32 = vmul.f32 %v4357_v49, %v2117_v27  ;;  %v2540_v21 = vld [vmem:[%s3947_s30 + $0x2b0] sm:$0xff]  ;;  %v2474_v27 = vld [vmem:[%s3947_s30 + $0xa0] sm:$0xff] }
 0x588   : > { %2783 = vst [vmem:[%s4371_s27 + $0x248] sm:$0xff] %v2655_v22  ;;  %v3365_v33 = vpop.f32.mrf.mxu0  ;;  %v3429_v35 = vpop.f32.mrf.mxu1 }
 0x589   : > { %2724 = vst [vmem:[%s4371_s27 + $0x70] sm:$0xff] %v2596_v29  ;;  %2788 = vst [vmem:[%s4371_s27 + $0x270] sm:$0xff] %v2660_v30  ;;  %v2594_v37 = vadd.f32 %v2466_v26, %v2338_v31  ;;  %v2658_v38 = vadd.f32 %v2530_v28, %v2402_v32  ;;  %v2341_v39 = vmul.f32 %v3365_v33, %v4357_v49  ;;  %v2538_v29 = vld [vmem:[%s3947_s30 + $0x2a0] sm:$0xff] }
 0x58a   : > { %v2405_v40 = vmul.f32 %v3429_v35, %v4357_v49  ;;  %v1864_v41 = vpop.f32.mrf.mxu0  ;;  %v2120_v43 = vpop.f32.mrf.mxu1  ;;  %v2477_v35 = vld [vmem:[%s3947_s30 + $0xb8] sm:$0xff] }
 0x58b   : > { %2722 = vst [vmem:[%s4371_s27 + $0x60] sm:$0xff] %v2594_v37  ;;  %2786 = vst [vmem:[%s4371_s27 + $0x260] sm:$0xff] %v2658_v38  ;;  %v2597_v45 = vadd.f32 %v2469_v34, %v2341_v39  ;;  %v2339_v47 = vmul.f32 %v4357_v49, %v1864_v41  ;;  %v2403_v48 = vmul.f32 %v4357_v49, %v2120_v43  ;;  %v2541_v37 = vld [vmem:[%s3947_s30 + $0x2b8] sm:$0xff]  ;;  %v2475_v43 = vld [vmem:[%s3947_s30 + $0xa8] sm:$0xff] }
 0x58c   : > { %v2661_v46 = vadd.f32 %v2533_v36, %v2405_v40  ;;  %v3368_v50 = vpop.f32.mrf.mxu0  ;;  %v3432_v52 = vpop.f32.mrf.mxu1 }
 0x58d   : > { %2725 = vst [vmem:[%s4371_s27 + $0x78] sm:$0xff] %v2597_v45  ;;  %v2595_v54 = vadd.f32 %v2467_v42, %v2339_v47  ;;  %v2659_v55 = vadd.f32 %v2531_v44, %v2403_v48  ;;  %v2344_v56 = vmul.f32 %v3368_v50, %v4357_v49  ;;  %v2408_v57 = vmul.f32 %v3432_v52, %v4357_v49  ;;  %v2539_v45 = vld [vmem:[%s3947_s30 + $0x2a8] sm:$0xff]  ;;  %v2480_v52 = vld [vmem:[%s3947_s30 + $0xd0] sm:$0xff] }
 0x58e   : > { %2789 = vst [vmem:[%s4371_s27 + $0x278] sm:$0xff] %v2661_v46  ;;  %v1877_v58 = vpop.f32.mrf.mxu0  ;;  %v2133_v60 = vpop.f32.mrf.mxu1 }
 0x58f   : > { %2723 = vst [vmem:[%s4371_s27 + $0x68] sm:$0xff] %v2595_v54  ;;  %2787 = vst [vmem:[%s4371_s27 + $0x268] sm:$0xff] %v2659_v55  ;;  %v2600_v62 = vadd.f32 %v2472_v51, %v2344_v56  ;;  %v2664_v63 = vadd.f32 %v2536_v53, %v2408_v57  ;;  %v2342_v1 = vmul.f32 %v4357_v49, %v1877_v58  ;;  %v2544_v54 = vld [vmem:[%s3947_s30 + $0x2d0] sm:$0xff] }
 0x590   : > { %v2406_v3 = vmul.f32 %v4357_v49, %v2133_v60  ;;  %v3369_v5 = vpop.f32.mrf.mxu0  ;;  %v3433_v7 = vpop.f32.mrf.mxu1  ;;  %v2478_v60 = vld [vmem:[%s3947_s30 + $0xc0] sm:$0xff] }
 0x591   : > { %2728 = vst [vmem:[%s4371_s27 + $0x90] sm:$0xff] %v2600_v62  ;;  %2792 = vst [vmem:[%s4371_s27 + $0x290] sm:$0xff] %v2664_v63  ;;  %v2598_v10 = vadd.f32 %v2470_v59, %v2342_v1  ;;  %v2345_v12 = vmul.f32 %v3369_v5, %v4357_v49  ;;  %v2409_v13 = vmul.f32 %v3433_v7, %v4357_v49  ;;  %v2542_v62 = vld [vmem:[%s3947_s30 + $0x2c0] sm:$0xff]  ;;  %v2481_v7 = vld [vmem:[%s3947_s30 + $0xd8] sm:$0xff] }
 0x592   : > { %v2662_v11 = vadd.f32 %v2534_v61, %v2406_v3  ;;  %v1880_v14 = vpop.f32.mrf.mxu0  ;;  %v2136_v16 = vpop.f32.mrf.mxu1 }
 0x593   : > { %2726 = vst [vmem:[%s4371_s27 + $0x80] sm:$0xff] %v2598_v10  ;;  %v2601_v8 = vadd.f32 %v2473_v6, %v2345_v12  ;;  %v2665_v9 = vadd.f32 %v2537_v0, %v2409_v13  ;;  %v2343_v17 = vmul.f32 %v4357_v49, %v1880_v14  ;;  %v2407_v2 = vmul.f32 %v4357_v49, %v2136_v16  ;;  %v2545_v10 = vld [vmem:[%s3947_s30 + $0x2d8] sm:$0xff]  ;;  %v2479_v16 = vld [vmem:[%s3947_s30 + $0xc8] sm:$0xff] }
 0x594   : > { %2790 = vst [vmem:[%s4371_s27 + $0x280] sm:$0xff] %v2662_v11  ;;  %v3372_v18 = vpop.f32.mrf.mxu0  ;;  %v3436_v20 = vpop.f32.mrf.mxu1 }
 0x595   : > { %2729 = vst [vmem:[%s4371_s27 + $0x98] sm:$0xff] %v2601_v8  ;;  %2793 = vst [vmem:[%s4371_s27 + $0x298] sm:$0xff] %v2665_v9  ;;  %v2599_v22 = vadd.f32 %v2471_v15, %v2343_v17  ;;  %v2663_v23 = vadd.f32 %v2535_v4, %v2407_v2  ;;  %v2348_v24 = vmul.f32 %v3372_v18, %v4357_v49  ;;  %v2543_v8 = vld [vmem:[%s3947_s30 + $0x2c8] sm:$0xff] }
 0x596   : > { %v2412_v25 = vmul.f32 %v3436_v20, %v4357_v49  ;;  %v1893_v26 = vpop.f32.mrf.mxu0  ;;  %v2149_v28 = vpop.f32.mrf.mxu1  ;;  %v2484_v20 = vld [vmem:[%s3947_s30 + $0xf0] sm:$0xff] }
 0x597   : > { %2727 = vst [vmem:[%s4371_s27 + $0x88] sm:$0xff] %v2599_v22  ;;  %2791 = vst [vmem:[%s4371_s27 + $0x288] sm:$0xff] %v2663_v23  ;;  %v2604_v30 = vadd.f32 %v2476_v19, %v2348_v24  ;;  %v2346_v32 = vmul.f32 %v4357_v49, %v1893_v26  ;;  %v2410_v33 = vmul.f32 %v4357_v49, %v2149_v28  ;;  %v2548_v22 = vld [vmem:[%s3947_s30 + $0x2f0] sm:$0xff]  ;;  %v2482_v28 = vld [vmem:[%s3947_s30 + $0xe0] sm:$0xff] }
 0x598   : > { %v2668_v31 = vadd.f32 %v2540_v21, %v2412_v25  ;;  %v3373_v34 = vpop.f32.mrf.mxu0  ;;  %v3437_v36 = vpop.f32.mrf.mxu1 }
 0x599   : > { %2732 = vst [vmem:[%s4371_s27 + $0xb0] sm:$0xff] %v2604_v30  ;;  %v2602_v38 = vadd.f32 %v2474_v27, %v2346_v32  ;;  %v2666_v39 = vadd.f32 %v2538_v29, %v2410_v33  ;;  %v2349_v40 = vmul.f32 %v3373_v34, %v4357_v49  ;;  %v2413_v41 = vmul.f32 %v3437_v36, %v4357_v49  ;;  %v2546_v30 = vld [vmem:[%s3947_s30 + $0x2e0] sm:$0xff]  ;;  %v2485_v36 = vld [vmem:[%s3947_s30 + $0xf8] sm:$0xff] }
 0x59a   : > { %2796 = vst [vmem:[%s4371_s27 + $0x2b0] sm:$0xff] %v2668_v31  ;;  %v1896_v42 = vpop.f32.mrf.mxu0  ;;  %v2152_v44 = vpop.f32.mrf.mxu1 }
 0x59b   : > { %2730 = vst [vmem:[%s4371_s27 + $0xa0] sm:$0xff] %v2602_v38  ;;  %2794 = vst [vmem:[%s4371_s27 + $0x2a0] sm:$0xff] %v2666_v39  ;;  %v2605_v46 = vadd.f32 %v2477_v35, %v2349_v40  ;;  %v2669_v47 = vadd.f32 %v2541_v37, %v2413_v41  ;;  %v2347_v48 = vmul.f32 %v4357_v49, %v1896_v42  ;;  %v2549_v38 = vld [vmem:[%s3947_s30 + $0x2f8] sm:$0xff] }
 0x59c   : > { %v2411_v50 = vmul.f32 %v4357_v49, %v2152_v44  ;;  %v3376_v51 = vpop.f32.mrf.mxu0  ;;  %v3440_v53 = vpop.f32.mrf.mxu1  ;;  %v2483_v44 = vld [vmem:[%s3947_s30 + $0xe8] sm:$0xff] }
 0x59d   : > { %2733 = vst [vmem:[%s4371_s27 + $0xb8] sm:$0xff] %v2605_v46  ;;  %2797 = vst [vmem:[%s4371_s27 + $0x2b8] sm:$0xff] %v2669_v47  ;;  %v2603_v55 = vadd.f32 %v2475_v43, %v2347_v48  ;;  %v2352_v57 = vmul.f32 %v3376_v51, %v4357_v49  ;;  %v2416_v58 = vmul.f32 %v3440_v53, %v4357_v49  ;;  %v2547_v46 = vld [vmem:[%s3947_s30 + $0x2e8] sm:$0xff]  ;;  %v2488_v53 = vld [vmem:[%s3947_s30 + $0x110] sm:$0xff] }
 0x59e   : > { %v2667_v56 = vadd.f32 %v2539_v45, %v2411_v50  ;;  %v1909_v59 = vpop.f32.mrf.mxu0  ;;  %v2165_v61 = vpop.f32.mrf.mxu1 }
 0x59f   : > { %2731 = vst [vmem:[%s4371_s27 + $0xa8] sm:$0xff] %v2603_v55  ;;  %v2608_v63 = vadd.f32 %v2480_v52, %v2352_v57  ;;  %v2672_v1 = vadd.f32 %v2544_v54, %v2416_v58  ;;  %v2350_v3 = vmul.f32 %v4357_v49, %v1909_v59  ;;  %v2414_v5 = vmul.f32 %v4357_v49, %v2165_v61  ;;  %v2552_v55 = vld [vmem:[%s3947_s30 + $0x310] sm:$0xff]  ;;  %v2486_v61 = vld [vmem:[%s3947_s30 + $0x100] sm:$0xff] }
 0x5a0   : > { %2795 = vst [vmem:[%s4371_s27 + $0x2a8] sm:$0xff] %v2667_v56  ;;  %v3377_v6 = vpop.f32.mrf.mxu0  ;;  %v3441_v0 = vpop.f32.mrf.mxu1 }
 0x5a1   : > { %2736 = vst [vmem:[%s4371_s27 + $0xd0] sm:$0xff] %v2608_v63  ;;  %2800 = vst [vmem:[%s4371_s27 + $0x2d0] sm:$0xff] %v2672_v1  ;;  %v2606_v11 = vadd.f32 %v2478_v60, %v2350_v3  ;;  %v2670_v12 = vadd.f32 %v2542_v62, %v2414_v5  ;;  %v2353_v13 = vmul.f32 %v3377_v6, %v4357_v49  ;;  %v2550_v63 = vld [vmem:[%s3947_s30 + $0x300] sm:$0xff] }
 0x5a2   : > { %v2417_v14 = vmul.f32 %v3441_v0, %v4357_v49  ;;  %v1912_v15 = vpop.f32.mrf.mxu0  ;;  %v2168_v4 = vpop.f32.mrf.mxu1  ;;  %v2489_v0 = vld [vmem:[%s3947_s30 + $0x118] sm:$0xff] }
 0x5a3   : > { %2734 = vst [vmem:[%s4371_s27 + $0xc0] sm:$0xff] %v2606_v11  ;;  %2798 = vst [vmem:[%s4371_s27 + $0x2c0] sm:$0xff] %v2670_v12  ;;  %v2609_v9 = vadd.f32 %v2481_v7, %v2353_v13  ;;  %v2351_v2 = vmul.f32 %v4357_v49, %v1912_v15  ;;  %v2415_v18 = vmul.f32 %v4357_v49, %v2168_v4  ;;  %v2553_v11 = vld [vmem:[%s3947_s30 + $0x318] sm:$0xff]  ;;  %v2487_v4 = vld [vmem:[%s3947_s30 + $0x108] sm:$0xff] }
 0x5a4   : > { %v2673_v17 = vadd.f32 %v2545_v10, %v2417_v14  ;;  %v3380_v19 = vpop.f32.mrf.mxu0  ;;  %v3444_v21 = vpop.f32.mrf.mxu1 }
 0x5a5   : > { %2737 = vst [vmem:[%s4371_s27 + $0xd8] sm:$0xff] %v2609_v9  ;;  %v2607_v23 = vadd.f32 %v2479_v16, %v2351_v2  ;;  %v2671_v24 = vadd.f32 %v2543_v8, %v2415_v18  ;;  %v2356_v25 = vmul.f32 %v3380_v19, %v4357_v49  ;;  %v2420_v26 = vmul.f32 %v3444_v21, %v4357_v49  ;;  %v2551_v9 = vld [vmem:[%s3947_s30 + $0x308] sm:$0xff]  ;;  %v2492_v21 = vld [vmem:[%s3947_s30 + $0x130] sm:$0xff] }
 0x5a6   : > { %2801 = vst [vmem:[%s4371_s27 + $0x2d8] sm:$0xff] %v2673_v17  ;;  %v1925_v27 = vpop.f32.mrf.mxu0  ;;  %v2181_v29 = vpop.f32.mrf.mxu1 }
 0x5a7   : > { %2735 = vst [vmem:[%s4371_s27 + $0xc8] sm:$0xff] %v2607_v23  ;;  %2799 = vst [vmem:[%s4371_s27 + $0x2c8] sm:$0xff] %v2671_v24  ;;  %v2612_v31 = vadd.f32 %v2484_v20, %v2356_v25  ;;  %v2676_v32 = vadd.f32 %v2548_v22, %v2420_v26  ;;  %v2354_v33 = vmul.f32 %v4357_v49, %v1925_v27  ;;  %v2556_v23 = vld [vmem:[%s3947_s30 + $0x330] sm:$0xff] }
 0x5a8   : > { %v2418_v34 = vmul.f32 %v4357_v49, %v2181_v29  ;;  %v3381_v35 = vpop.f32.mrf.mxu0  ;;  %v3445_v37 = vpop.f32.mrf.mxu1  ;;  %v2490_v29 = vld [vmem:[%s3947_s30 + $0x120] sm:$0xff] }
 0x5a9   : > { %2740 = vst [vmem:[%s4371_s27 + $0xf0] sm:$0xff] %v2612_v31  ;;  %2804 = vst [vmem:[%s4371_s27 + $0x2f0] sm:$0xff] %v2676_v32  ;;  %v2610_v39 = vadd.f32 %v2482_v28, %v2354_v33  ;;  %v2357_v41 = vmul.f32 %v3381_v35, %v4357_v49  ;;  %v2421_v42 = vmul.f32 %v3445_v37, %v4357_v49  ;;  %v2554_v31 = vld [vmem:[%s3947_s30 + $0x320] sm:$0xff]  ;;  %v2493_v37 = vld [vmem:[%s3947_s30 + $0x138] sm:$0xff] }
 0x5aa   : > { %v2674_v40 = vadd.f32 %v2546_v30, %v2418_v34  ;;  %v1928_v43 = vpop.f32.mrf.mxu0  ;;  %v2184_v45 = vpop.f32.mrf.mxu1 }
 0x5ab   : > { %2738 = vst [vmem:[%s4371_s27 + $0xe0] sm:$0xff] %v2610_v39  ;;  %v2613_v47 = vadd.f32 %v2485_v36, %v2357_v41  ;;  %v2677_v48 = vadd.f32 %v2549_v38, %v2421_v42  ;;  %v2355_v50 = vmul.f32 %v4357_v49, %v1928_v43  ;;  %v2419_v51 = vmul.f32 %v4357_v49, %v2184_v45  ;;  %v2557_v39 = vld [vmem:[%s3947_s30 + $0x338] sm:$0xff]  ;;  %v2491_v45 = vld [vmem:[%s3947_s30 + $0x128] sm:$0xff] }
 0x5ac   : > { %2802 = vst [vmem:[%s4371_s27 + $0x2e0] sm:$0xff] %v2674_v40  ;;  %v3384_v52 = vpop.f32.mrf.mxu0  ;;  %v3448_v54 = vpop.f32.mrf.mxu1 }
 0x5ad   : > { %2741 = vst [vmem:[%s4371_s27 + $0xf8] sm:$0xff] %v2613_v47  ;;  %2805 = vst [vmem:[%s4371_s27 + $0x2f8] sm:$0xff] %v2677_v48  ;;  %v2611_v56 = vadd.f32 %v2483_v44, %v2355_v50  ;;  %v2675_v57 = vadd.f32 %v2547_v46, %v2419_v51  ;;  %v2360_v58 = vmul.f32 %v3384_v52, %v4357_v49  ;;  %v2555_v47 = vld [vmem:[%s3947_s30 + $0x328] sm:$0xff] }
 0x5ae   : > { %v2424_v59 = vmul.f32 %v3448_v54, %v4357_v49  ;;  %v1941_v60 = vpop.f32.mrf.mxu0  ;;  %v2197_v62 = vpop.f32.mrf.mxu1  ;;  %v2496_v54 = vld [vmem:[%s3947_s30 + $0x150] sm:$0xff] }
 0x5af   : > { %2739 = vst [vmem:[%s4371_s27 + $0xe8] sm:$0xff] %v2611_v56  ;;  %2803 = vst [vmem:[%s4371_s27 + $0x2e8] sm:$0xff] %v2675_v57  ;;  %v2616_v1 = vadd.f32 %v2488_v53, %v2360_v58  ;;  %v2358_v5 = vmul.f32 %v4357_v49, %v1941_v60  ;;  %v2422_v6 = vmul.f32 %v4357_v49, %v2197_v62  ;;  %v2560_v56 = vld [vmem:[%s3947_s30 + $0x350] sm:$0xff]  ;;  %v2494_v62 = vld [vmem:[%s3947_s30 + $0x140] sm:$0xff] }
 0x5b0   : > { %v2680_v3 = vadd.f32 %v2552_v55, %v2424_v59  ;;  %v3385_v7 = vpop.f32.mrf.mxu0  ;;  %v3449_v10 = vpop.f32.mrf.mxu1 }
 0x5b1   : > { %2744 = vst [vmem:[%s4371_s27 + $0x110] sm:$0xff] %v2616_v1  ;;  %v2614_v12 = vadd.f32 %v2486_v61, %v2358_v5  ;;  %v2678_v13 = vadd.f32 %v2550_v63, %v2422_v6  ;;  %v2361_v14 = vmul.f32 %v3385_v7, %v4357_v49  ;;  %v2425_v15 = vmul.f32 %v3449_v10, %v4357_v49  ;;  %v2558_v1 = vld [vmem:[%s3947_s30 + $0x340] sm:$0xff]  ;;  %v2497_v10 = vld [vmem:[%s3947_s30 + $0x158] sm:$0xff] }
 0x5b2   : > { %2808 = vst [vmem:[%s4371_s27 + $0x310] sm:$0xff] %v2680_v3  ;;  %v1944_v16 = vpop.f32.mrf.mxu0  ;;  %v2200_v8 = vpop.f32.mrf.mxu1 }
 0x5b3   : > { %2742 = vst [vmem:[%s4371_s27 + $0x100] sm:$0xff] %v2614_v12  ;;  %2806 = vst [vmem:[%s4371_s27 + $0x300] sm:$0xff] %v2678_v13  ;;  %v2617_v17 = vadd.f32 %v2489_v0, %v2361_v14  ;;  %v2681_v2 = vadd.f32 %v2553_v11, %v2425_v15  ;;  %v2359_v18 = vmul.f32 %v4357_v49, %v1944_v16  ;;  %v2561_v12 = vld [vmem:[%s3947_s30 + $0x358] sm:$0xff] }
 0x5b4   : > { %v2423_v19 = vmul.f32 %v4357_v49, %v2200_v8  ;;  %v3388_v20 = vpop.f32.mrf.mxu0  ;;  %v3452_v22 = vpop.f32.mrf.mxu1  ;;  %v2495_v8 = vld [vmem:[%s3947_s30 + $0x148] sm:$0xff] }
 0x5b5   : > { %2745 = vst [vmem:[%s4371_s27 + $0x118] sm:$0xff] %v2617_v17  ;;  %2809 = vst [vmem:[%s4371_s27 + $0x318] sm:$0xff] %v2681_v2  ;;  %v2615_v24 = vadd.f32 %v2487_v4, %v2359_v18  ;;  %v2364_v26 = vmul.f32 %v3388_v20, %v4357_v49  ;;  %v2428_v27 = vmul.f32 %v3452_v22, %v4357_v49  ;;  %v2559_v17 = vld [vmem:[%s3947_s30 + $0x348] sm:$0xff]  ;;  %v2500_v22 = vld [vmem:[%s3947_s30 + $0x170] sm:$0xff] }
 0x5b6   : > { %v2679_v25 = vadd.f32 %v2551_v9, %v2423_v19  ;;  %v1957_v28 = vpop.f32.mrf.mxu0  ;;  %v2213_v30 = vpop.f32.mrf.mxu1 }
 0x5b7   : > { %2743 = vst [vmem:[%s4371_s27 + $0x108] sm:$0xff] %v2615_v24  ;;  %v2620_v32 = vadd.f32 %v2492_v21, %v2364_v26  ;;  %v2684_v33 = vadd.f32 %v2556_v23, %v2428_v27  ;;  %v2362_v34 = vmul.f32 %v4357_v49, %v1957_v28  ;;  %v2426_v35 = vmul.f32 %v4357_v49, %v2213_v30  ;;  %v2564_v24 = vld [vmem:[%s3947_s30 + $0x370] sm:$0xff]  ;;  %v2498_v30 = vld [vmem:[%s3947_s30 + $0x160] sm:$0xff] }
 0x5b8   : > { %2807 = vst [vmem:[%s4371_s27 + $0x308] sm:$0xff] %v2679_v25  ;;  %v3389_v36 = vpop.f32.mrf.mxu0  ;;  %v3453_v38 = vpop.f32.mrf.mxu1 }
 0x5b9   : > { %2748 = vst [vmem:[%s4371_s27 + $0x130] sm:$0xff] %v2620_v32  ;;  %2812 = vst [vmem:[%s4371_s27 + $0x330] sm:$0xff] %v2684_v33  ;;  %v2618_v40 = vadd.f32 %v2490_v29, %v2362_v34  ;;  %v2682_v41 = vadd.f32 %v2554_v31, %v2426_v35  ;;  %v2365_v42 = vmul.f32 %v3389_v36, %v4357_v49  ;;  %v2562_v32 = vld [vmem:[%s3947_s30 + $0x360] sm:$0xff] }
 0x5ba   : > { %v2429_v43 = vmul.f32 %v3453_v38, %v4357_v49  ;;  %v1960_v44 = vpop.f32.mrf.mxu0  ;;  %v2216_v46 = vpop.f32.mrf.mxu1  ;;  %v2501_v38 = vld [vmem:[%s3947_s30 + $0x178] sm:$0xff] }
 0x5bb   : > { %2746 = vst [vmem:[%s4371_s27 + $0x120] sm:$0xff] %v2618_v40  ;;  %2810 = vst [vmem:[%s4371_s27 + $0x320] sm:$0xff] %v2682_v41  ;;  %v2621_v48 = vadd.f32 %v2493_v37, %v2365_v42  ;;  %v2363_v51 = vmul.f32 %v4357_v49, %v1960_v44  ;;  %v2427_v52 = vmul.f32 %v4357_v49, %v2216_v46  ;;  %v2565_v40 = vld [vmem:[%s3947_s30 + $0x378] sm:$0xff]  ;;  %v2499_v46 = vld [vmem:[%s3947_s30 + $0x168] sm:$0xff] }
 0x5bc   : > { %v2685_v50 = vadd.f32 %v2557_v39, %v2429_v43  ;;  %v3392_v53 = vpop.f32.mrf.mxu0  ;;  %v3456_v55 = vpop.f32.mrf.mxu1 }
 0x5bd   : > { %2749 = vst [vmem:[%s4371_s27 + $0x138] sm:$0xff] %v2621_v48  ;;  %v2619_v57 = vadd.f32 %v2491_v45, %v2363_v51  ;;  %v2683_v58 = vadd.f32 %v2555_v47, %v2427_v52  ;;  %v2368_v59 = vmul.f32 %v3392_v53, %v4357_v49  ;;  %v2432_v60 = vmul.f32 %v3456_v55, %v4357_v49  ;;  %v2563_v48 = vld [vmem:[%s3947_s30 + $0x368] sm:$0xff]  ;;  %v2504_v55 = vld [vmem:[%s3947_s30 + $0x190] sm:$0xff] }
 0x5be   : > { %2813 = vst [vmem:[%s4371_s27 + $0x338] sm:$0xff] %v2685_v50  ;;  %v1973_v61 = vpop.f32.mrf.mxu0  ;;  %v2229_v63 = vpop.f32.mrf.mxu1 }
 0x5bf   : > { %2747 = vst [vmem:[%s4371_s27 + $0x128] sm:$0xff] %v2619_v57  ;;  %2811 = vst [vmem:[%s4371_s27 + $0x328] sm:$0xff] %v2683_v58  ;;  %v2624_v3 = vadd.f32 %v2496_v54, %v2368_v59  ;;  %v2688_v5 = vadd.f32 %v2560_v56, %v2432_v60  ;;  %v2366_v6 = vmul.f32 %v4357_v49, %v1973_v61  ;;  %v2568_v57 = vld [vmem:[%s3947_s30 + $0x390] sm:$0xff] }
 0x5c0   : > { %v2430_v7 = vmul.f32 %v4357_v49, %v2229_v63  ;;  %v3393_v0 = vpop.f32.mrf.mxu0  ;;  %v3457_v11 = vpop.f32.mrf.mxu1  ;;  %v2502_v63 = vld [vmem:[%s3947_s30 + $0x180] sm:$0xff] }
 0x5c1   : > { %2752 = vst [vmem:[%s4371_s27 + $0x150] sm:$0xff] %v2624_v3  ;;  %2816 = vst [vmem:[%s4371_s27 + $0x350] sm:$0xff] %v2688_v5  ;;  %v2622_v13 = vadd.f32 %v2494_v62, %v2366_v6  ;;  %v2369_v15 = vmul.f32 %v3393_v0, %v4357_v49  ;;  %v2433_v16 = vmul.f32 %v3457_v11, %v4357_v49  ;;  %v2566_v3 = vld [vmem:[%s3947_s30 + $0x380] sm:$0xff]  ;;  %v2505_v11 = vld [vmem:[%s3947_s30 + $0x198] sm:$0xff] }
 0x5c2   : > { %v2686_v14 = vadd.f32 %v2558_v1, %v2430_v7  ;;  %v1976_v4 = vpop.f32.mrf.mxu0  ;;  %v2232_v9 = vpop.f32.mrf.mxu1 }
 0x5c3   : > { %2750 = vst [vmem:[%s4371_s27 + $0x140] sm:$0xff] %v2622_v13  ;;  %v2625_v2 = vadd.f32 %v2497_v10, %v2369_v15  ;;  %v2689_v18 = vadd.f32 %v2561_v12, %v2433_v16  ;;  %v2367_v19 = vmul.f32 %v4357_v49, %v1976_v4  ;;  %v2431_v20 = vmul.f32 %v4357_v49, %v2232_v9  ;;  %v2569_v13 = vld [vmem:[%s3947_s30 + $0x398] sm:$0xff]  ;;  %v2503_v9 = vld [vmem:[%s3947_s30 + $0x188] sm:$0xff] }
 0x5c4   : > { %2814 = vst [vmem:[%s4371_s27 + $0x340] sm:$0xff] %v2686_v14  ;;  %v3396_v21 = vpop.f32.mrf.mxu0  ;;  %v3460_v23 = vpop.f32.mrf.mxu1 }
 0x5c5   : > { %2753 = vst [vmem:[%s4371_s27 + $0x158] sm:$0xff] %v2625_v2  ;;  %2817 = vst [vmem:[%s4371_s27 + $0x358] sm:$0xff] %v2689_v18  ;;  %v2623_v25 = vadd.f32 %v2495_v8, %v2367_v19  ;;  %v2687_v26 = vadd.f32 %v2559_v17, %v2431_v20  ;;  %v2372_v27 = vmul.f32 %v3396_v21, %v4357_v49  ;;  %v2567_v2 = vld [vmem:[%s3947_s30 + $0x388] sm:$0xff] }
 0x5c6   : > { %v2436_v28 = vmul.f32 %v3460_v23, %v4357_v49  ;;  %v1989_v29 = vpop.f32.mrf.mxu0  ;;  %v2245_v31 = vpop.f32.mrf.mxu1  ;;  %v2508_v23 = vld [vmem:[%s3947_s30 + $0x1b0] sm:$0xff] }
 0x5c7   : > { %2751 = vst [vmem:[%s4371_s27 + $0x148] sm:$0xff] %v2623_v25  ;;  %2815 = vst [vmem:[%s4371_s27 + $0x348] sm:$0xff] %v2687_v26  ;;  %v2628_v33 = vadd.f32 %v2500_v22, %v2372_v27  ;;  %v2370_v35 = vmul.f32 %v4357_v49, %v1989_v29  ;;  %v2434_v36 = vmul.f32 %v4357_v49, %v2245_v31  ;;  %v2572_v25 = vld [vmem:[%s3947_s30 + $0x3b0] sm:$0xff]  ;;  %v2506_v31 = vld [vmem:[%s3947_s30 + $0x1a0] sm:$0xff] }
 0x5c8   : > { %v2692_v34 = vadd.f32 %v2564_v24, %v2436_v28  ;;  %v3397_v37 = vpop.f32.mrf.mxu0  ;;  %v3461_v39 = vpop.f32.mrf.mxu1 }
 0x5c9   : > { %2756 = vst [vmem:[%s4371_s27 + $0x170] sm:$0xff] %v2628_v33  ;;  %v2626_v41 = vadd.f32 %v2498_v30, %v2370_v35  ;;  %v2690_v42 = vadd.f32 %v2562_v32, %v2434_v36  ;;  %v2373_v43 = vmul.f32 %v3397_v37, %v4357_v49  ;;  %v2437_v44 = vmul.f32 %v3461_v39, %v4357_v49  ;;  %v2570_v33 = vld [vmem:[%s3947_s30 + $0x3a0] sm:$0xff]  ;;  %v2509_v39 = vld [vmem:[%s3947_s30 + $0x1b8] sm:$0xff] }
 0x5ca   : > { %2820 = vst [vmem:[%s4371_s27 + $0x370] sm:$0xff] %v2692_v34  ;;  %v1992_v45 = vpop.f32.mrf.mxu0  ;;  %v2248_v47 = vpop.f32.mrf.mxu1 }
 0x5cb   : > { %2754 = vst [vmem:[%s4371_s27 + $0x160] sm:$0xff] %v2626_v41  ;;  %2818 = vst [vmem:[%s4371_s27 + $0x360] sm:$0xff] %v2690_v42  ;;  %v2629_v50 = vadd.f32 %v2501_v38, %v2373_v43  ;;  %v2693_v51 = vadd.f32 %v2565_v40, %v2437_v44  ;;  %v2371_v52 = vmul.f32 %v4357_v49, %v1992_v45  ;;  %v2573_v41 = vld [vmem:[%s3947_s30 + $0x3b8] sm:$0xff] }
 0x5cc   : > { %v2435_v53 = vmul.f32 %v4357_v49, %v2248_v47  ;;  %v3400_v54 = vpop.f32.mrf.mxu0  ;;  %v3464_v56 = vpop.f32.mrf.mxu1  ;;  %v2507_v47 = vld [vmem:[%s3947_s30 + $0x1a8] sm:$0xff] }
 0x5cd   : > { %2757 = vst [vmem:[%s4371_s27 + $0x178] sm:$0xff] %v2629_v50  ;;  %2821 = vst [vmem:[%s4371_s27 + $0x378] sm:$0xff] %v2693_v51  ;;  %v2627_v58 = vadd.f32 %v2499_v46, %v2371_v52  ;;  %v2376_v60 = vmul.f32 %v3400_v54, %v4357_v49  ;;  %v2440_v61 = vmul.f32 %v3464_v56, %v4357_v49  ;;  %v2571_v50 = vld [vmem:[%s3947_s30 + $0x3a8] sm:$0xff]  ;;  %v2512_v56 = vld [vmem:[%s3947_s30 + $0x1d0] sm:$0xff] }
 0x5ce   : > { %v2691_v59 = vadd.f32 %v2563_v48, %v2435_v53  ;;  %v2005_v62 = vpop.f32.mrf.mxu0  ;;  %v2261_v1 = vpop.f32.mrf.mxu1 }
 0x5cf   : > { %2755 = vst [vmem:[%s4371_s27 + $0x168] sm:$0xff] %v2627_v58  ;;  %v2632_v5 = vadd.f32 %v2504_v55, %v2376_v60  ;;  %v2696_v6 = vadd.f32 %v2568_v57, %v2440_v61  ;;  %v2374_v7 = vmul.f32 %v4357_v49, %v2005_v62  ;;  %v2438_v0 = vmul.f32 %v4357_v49, %v2261_v1  ;;  %v2576_v58 = vld [vmem:[%s3947_s30 + $0x3d0] sm:$0xff]  ;;  %v2510_v1 = vld [vmem:[%s3947_s30 + $0x1c0] sm:$0xff] }
 0x5d0   : > { %2819 = vst [vmem:[%s4371_s27 + $0x368] sm:$0xff] %v2691_v59  ;;  %v3401_v10 = vpop.f32.mrf.mxu0  ;;  %v3465_v12 = vpop.f32.mrf.mxu1 }
 0x5d1   : > { %2760 = vst [vmem:[%s4371_s27 + $0x190] sm:$0xff] %v2632_v5  ;;  %2824 = vst [vmem:[%s4371_s27 + $0x390] sm:$0xff] %v2696_v6  ;;  %v2630_v14 = vadd.f32 %v2502_v63, %v2374_v7  ;;  %v2694_v15 = vadd.f32 %v2566_v3, %v2438_v0  ;;  %v2377_v16 = vmul.f32 %v3401_v10, %v4357_v49  ;;  %v2574_v5 = vld [vmem:[%s3947_s30 + $0x3c0] sm:$0xff] }
 0x5d2   : > { %v2441_v4 = vmul.f32 %v3465_v12, %v4357_v49  ;;  %v2008_v8 = vpop.f32.mrf.mxu0  ;;  %v2264_v17 = vpop.f32.mrf.mxu1  ;;  %v2513_v12 = vld [vmem:[%s3947_s30 + $0x1d8] sm:$0xff] }
 0x5d3   : > { %2758 = vst [vmem:[%s4371_s27 + $0x180] sm:$0xff] %v2630_v14  ;;  %2822 = vst [vmem:[%s4371_s27 + $0x380] sm:$0xff] %v2694_v15  ;;  %v2633_v18 = vadd.f32 %v2505_v11, %v2377_v16  ;;  %v2375_v20 = vmul.f32 %v4357_v49, %v2008_v8  ;;  %v2439_v21 = vmul.f32 %v4357_v49, %v2264_v17  ;;  %v2577_v14 = vld [vmem:[%s3947_s30 + $0x3d8] sm:$0xff]  ;;  %v2511_v17 = vld [vmem:[%s3947_s30 + $0x1c8] sm:$0xff] }
 0x5d4   : > { %v2697_v19 = vadd.f32 %v2569_v13, %v2441_v4  ;;  %v3404_v22 = vpop.f32.mrf.mxu0  ;;  %v3468_v24 = vpop.f32.mrf.mxu1 }
 0x5d5   : > { %2761 = vst [vmem:[%s4371_s27 + $0x198] sm:$0xff] %v2633_v18  ;;  %v2631_v26 = vadd.f32 %v2503_v9, %v2375_v20  ;;  %v2695_v27 = vadd.f32 %v2567_v2, %v2439_v21  ;;  %v2380_v28 = vmul.f32 %v3404_v22, %v4357_v49  ;;  %v2444_v29 = vmul.f32 %v3468_v24, %v4357_v49  ;;  %v2575_v18 = vld [vmem:[%s3947_s30 + $0x3c8] sm:$0xff]  ;;  %v2516_v24 = vld [vmem:[%s3947_s30 + $0x1f0] sm:$0xff] }
 0x5d6   : > { %2825 = vst [vmem:[%s4371_s27 + $0x398] sm:$0xff] %v2697_v19  ;;  %v2021_v30 = vpop.f32.mrf.mxu0  ;;  %v2277_v32 = vpop.f32.mrf.mxu1 }
 0x5d7   : > { %2759 = vst [vmem:[%s4371_s27 + $0x188] sm:$0xff] %v2631_v26  ;;  %2823 = vst [vmem:[%s4371_s27 + $0x388] sm:$0xff] %v2695_v27  ;;  %v2636_v34 = vadd.f32 %v2508_v23, %v2380_v28  ;;  %v2700_v35 = vadd.f32 %v2572_v25, %v2444_v29  ;;  %v2378_v36 = vmul.f32 %v4357_v49, %v2021_v30  ;;  %v2580_v26 = vld [vmem:[%s3947_s30 + $0x3f0] sm:$0xff] }
 0x5d8   : > { %v2442_v37 = vmul.f32 %v4357_v49, %v2277_v32  ;;  %v3405_v38 = vpop.f32.mrf.mxu0  ;;  %v3469_v40 = vpop.f32.mrf.mxu1  ;;  %v2514_v32 = vld [vmem:[%s3947_s30 + $0x1e0] sm:$0xff] }
 0x5d9   : > { %2764 = vst [vmem:[%s4371_s27 + $0x1b0] sm:$0xff] %v2636_v34  ;;  %2828 = vst [vmem:[%s4371_s27 + $0x3b0] sm:$0xff] %v2700_v35  ;;  %v2634_v42 = vadd.f32 %v2506_v31, %v2378_v36  ;;  %v2381_v44 = vmul.f32 %v3405_v38, %v4357_v49  ;;  %v2445_v45 = vmul.f32 %v3469_v40, %v4357_v49  ;;  %v2578_v34 = vld [vmem:[%s3947_s30 + $0x3e0] sm:$0xff]  ;;  %v2517_v40 = vld [vmem:[%s3947_s30 + $0x1f8] sm:$0xff] }
 0x5da   : > { %v2698_v43 = vadd.f32 %v2570_v33, %v2442_v37  ;;  %v2024_v46 = vpop.f32.mrf.mxu0  ;;  %v2280_v48 = vpop.f32.mrf.mxu1 }
 0x5db   : > { %2762 = vst [vmem:[%s4371_s27 + $0x1a0] sm:$0xff] %v2634_v42  ;;  %v2637_v51 = vadd.f32 %v2509_v39, %v2381_v44  ;;  %v2701_v52 = vadd.f32 %v2573_v41, %v2445_v45  ;;  %v2379_v53 = vmul.f32 %v4357_v49, %v2024_v46  ;;  %v2443_v54 = vmul.f32 %v4357_v49, %v2280_v48  ;;  %v2581_v42 = vld [vmem:[%s3947_s30 + $0x3f8] sm:$0xff]  ;;  %v2515_v48 = vld [vmem:[%s3947_s30 + $0x1e8] sm:$0xff] }
 0x5dc   : > { %2826 = vst [vmem:[%s4371_s27 + $0x3a0] sm:$0xff] %v2698_v43  ;;  %v3408_v55 = vpop.f32.mrf.mxu0  ;;  %v3472_v57 = vpop.f32.mrf.mxu1 }
 0x5dd   : > { %2765 = vst [vmem:[%s4371_s27 + $0x1b8] sm:$0xff] %v2637_v51  ;;  %2829 = vst [vmem:[%s4371_s27 + $0x3b8] sm:$0xff] %v2701_v52  ;;  %v2635_v59 = vadd.f32 %v2507_v47, %v2379_v53  ;;  %v2699_v60 = vadd.f32 %v2571_v50, %v2443_v54  ;;  %v2384_v61 = vmul.f32 %v3408_v55, %v4357_v49  ;;  %v2579_v51 = vld [vmem:[%s3947_s30 + $0x3e8] sm:$0xff]  ;;  %s2839_s30 = scalar_lea.sflag [#allocation6], %s3941_s15 }
 0x5de   : > { %v2448_v62 = vmul.f32 %v3472_v57, %v4357_v49  ;;  %v2037_v63 = vpop.f32.mrf.mxu0  ;;  %v2293_v3 = vpop.f32.mrf.mxu1 }
 0x5df   : > { %2763 = vst [vmem:[%s4371_s27 + $0x1a8] sm:$0xff] %v2635_v59  ;;  %2827 = vst [vmem:[%s4371_s27 + $0x3a8] sm:$0xff] %v2699_v60  ;;  %v2640_v6 = vadd.f32 %v2512_v56, %v2384_v61  ;;  %v2382_v0 = vmul.f32 %v4357_v49, %v2037_v63  ;;  %v2446_v10 = vmul.f32 %v4357_v49, %v2293_v3 }
 0x5e0   : > { %v2704_v7 = vadd.f32 %v2576_v58, %v2448_v62  ;;  %v3409_v11 = vpop.f32.mrf.mxu0  ;;  %v3473_v13 = vpop.f32.mrf.mxu1 }
 0x5e1   : > { %2768 = vst [vmem:[%s4371_s27 + $0x1d0] sm:$0xff] %v2640_v6  ;;  %v2638_v15 = vadd.f32 %v2510_v1, %v2382_v0  ;;  %v2702_v16 = vadd.f32 %v2574_v5, %v2446_v10  ;;  %v2385_v4 = vmul.f32 %v3409_v11, %v4357_v49  ;;  %v2449_v8 = vmul.f32 %v3473_v13, %v4357_v49 }
 0x5e2   : > { %2832 = vst [vmem:[%s4371_s27 + $0x3d0] sm:$0xff] %v2704_v7  ;;  %v2040_v9 = vpop.f32.mrf.mxu0  ;;  %v2296_v2 = vpop.f32.mrf.mxu1 }
 0x5e3   : > { %2766 = vst [vmem:[%s4371_s27 + $0x1c0] sm:$0xff] %v2638_v15  ;;  %2830 = vst [vmem:[%s4371_s27 + $0x3c0] sm:$0xff] %v2702_v16  ;;  %v2641_v19 = vadd.f32 %v2513_v12, %v2385_v4  ;;  %v2705_v20 = vadd.f32 %v2577_v14, %v2449_v8  ;;  %v2383_v21 = vmul.f32 %v4357_v49, %v2040_v9 }
 0x5e4   : > { %v2447_v22 = vmul.f32 %v4357_v49, %v2296_v2  ;;  %v3412_v23 = vpop.f32.mrf.mxu0  ;;  %v3476_v25 = vpop.f32.mrf.mxu1 }
 0x5e5   : > { %2769 = vst [vmem:[%s4371_s27 + $0x1d8] sm:$0xff] %v2641_v19  ;;  %2833 = vst [vmem:[%s4371_s27 + $0x3d8] sm:$0xff] %v2705_v20  ;;  %v2639_v27 = vadd.f32 %v2511_v17, %v2383_v21  ;;  %v2388_v29 = vmul.f32 %v3412_v23, %v4357_v49  ;;  %v2452_v30 = vmul.f32 %v3476_v25, %v4357_v49 }
 0x5e6   : > { %v2703_v28 = vadd.f32 %v2575_v18, %v2447_v22  ;;  %v2053_v31 = vpop.f32.mrf.mxu0  ;;  %v2309_v33 = vpop.f32.mrf.mxu1 }
 0x5e7   : > { %2767 = vst [vmem:[%s4371_s27 + $0x1c8] sm:$0xff] %v2639_v27  ;;  %v2644_v35 = vadd.f32 %v2516_v24, %v2388_v29  ;;  %v2708_v36 = vadd.f32 %v2580_v26, %v2452_v30  ;;  %v2386_v37 = vmul.f32 %v4357_v49, %v2053_v31  ;;  %v2450_v38 = vmul.f32 %v4357_v49, %v2309_v33 }
 0x5e8   : > { %2831 = vst [vmem:[%s4371_s27 + $0x3c8] sm:$0xff] %v2703_v28  ;;  %v3413_v39 = vpop.f32.mrf.mxu0  ;;  %v3477_v41 = vpop.f32.mrf.mxu1 }
 0x5e9   : > { %2772 = vst [vmem:[%s4371_s27 + $0x1f0] sm:$0xff] %v2644_v35  ;;  %2836 = vst [vmem:[%s4371_s27 + $0x3f0] sm:$0xff] %v2708_v36  ;;  %v2642_v43 = vadd.f32 %v2514_v32, %v2386_v37  ;;  %v2706_v44 = vadd.f32 %v2578_v34, %v2450_v38  ;;  %v2389_v45 = vmul.f32 %v3413_v39, %v4357_v49 }
 0x5ea   : > { %v2453_v46 = vmul.f32 %v3477_v41, %v4357_v49  ;;  %v2056_v47 = vpop.f32.mrf.mxu0  ;;  %v2312_v50 = vpop.f32.mrf.mxu1 }
 0x5eb   : > { %2770 = vst [vmem:[%s4371_s27 + $0x1e0] sm:$0xff] %v2642_v43  ;;  %2834 = vst [vmem:[%s4371_s27 + $0x3e0] sm:$0xff] %v2706_v44  ;;  %v2645_v52 = vadd.f32 %v2517_v40, %v2389_v45  ;;  %v2387_v54 = vmul.f32 %v4357_v49, %v2056_v47  ;;  %v2451_v55 = vmul.f32 %v4357_v49, %v2312_v50 }
 0x5ec   : > { %v2709_v53 = vadd.f32 %v2581_v42, %v2453_v46 }
 0x5ed   : > { %2773 = vst [vmem:[%s4371_s27 + $0x1f8] sm:$0xff] %v2645_v52  ;;  %v2643_v56 = vadd.f32 %v2515_v48, %v2387_v54  ;;  %v2707_v57 = vadd.f32 %v2579_v51, %v2451_v55 }
 0x5ee   : > { %2837 = vst [vmem:[%s4371_s27 + $0x3f8] sm:$0xff] %v2709_v53 }
 0x5ef   : > { %2771 = vst [vmem:[%s4371_s27 + $0x1e8] sm:$0xff] %v2643_v56  ;;  %2835 = vst [vmem:[%s4371_s27 + $0x3e8] sm:$0xff] %v2707_v57 }
 0x5f0   : > { %3728 = shalt.err (!%p3725_p7)
}
 0x5f1   : > { %s3729_s1 = scalar_lea.hbm %s4748_s14, 16384  ;;  %s3733_s29 = scalar_lea.hbm %s4811_s9, 32768 }
 0x5f2   : > { %p3730_p10 = scmp.ne.s32.totalorder %s4748_s14, %s3729_s1  ;;  %p3734_p2 = scmp.lt.s32.totalorder %s4748_s14, %s4811_s9 }
 0x5f3   : > { %p3735_p12 = scmp.lt.s32.totalorder %s3733_s29, %s3729_s1 }
 0x5f4   : > { %p3731_p4 = pnand %p3730_p10, %p3908_p9 }
 0x5f5   : > { %p3736_p8 = por %p3735_p12, %p3734_p2 }
 0x5f6   : > { %p3732_p13 = pneg %p3731_p4 }
 0x5f8   : > { %p3737_p0 = pnand %p3736_p8, %p3732_p13 }
 0x5fa   : > { %3740 = shalt.err (!%p3737_p0)
}
 0x5fb   : > { %s3802_s18 = smov 128   ;;  %s3803_s28 = smov 8  }
 0x5fc   : > { %3488 = dma.vmem_to_hbm [thread:$0]  (%p3908_p9), %s4750_s26, 16384, %s4748_s14, %s2839_s30, %s3802_s18, %s3802_s18, %s3803_s28  }
 0x5fd PF: > { %s2869_s21 = sand.u32 1, %s3775_s11   ;;  %p4825_p1 = scmp.ge.s32.totalorder %s3795_s16, 2 }
 0x5fe   : > { %s2870_s17 = scalar_lea.sflag [#allocation6], %s2869_s21 }
 0x5ff   : > { %p3495_p3 = pnand %p4825_p1, %p3915_p11 }
 0x601   : > { %p3496_p5 = pneg %p3495_p3 }
 0x603   : > { %3770 = dma.done.wait (%p3496_p5), %s2870_s17, 16384  }
 0x604   : > { %3772 = vsyncadd (%p3496_p5), %s2870_s17, 4294950912  ;;  %s26_s16 = sadd.s32 1, %s3795_s16   ;;  %s4826_s14 = sld [smem:[#allocation10_spill]] }
 0x605   : > { %p23_p6 = scmp.ge.s32.totalorder %s26_s16, 4   ;;  %s4827_s15 = sld [smem:[#allocation11_spill]] }
 0x606   : > { %s4828_s11 = smov %s3779_s12  ;;  %s4829_s12 = smov %s3783_s13 }
 0x607   : > { %s4830_s13 = smov %s3913_s24  ;;  %25 = sbr.rel (!%p23_p6) target bundleno = 9 (0x9), region = 112 }
 0x60c   :  { %2875 = vsyncpa [#allocation5], 1 }
 0x60d   :  { %2877 = vsyncpa [#allocation5 + $0x1], 1 }
 0x60e   :  { %2878 = vsyncpa [#allocation6], 1 }
 0x60f   :  { %2880 = vsyncpa [#allocation6 + $0x1], 1 }

</bundles_post_ra>
